<compile_context>
chip_gen: v6e
topology: v6e:2x2x1
jax: 0.10.0
libtpu: 0.0.40
codegen_flags: <defaults>
</compile_context>

<pallas_src>
import math
import functools

import jax
import jax.numpy as jnp
from jax import lax
from jax.experimental import pallas as pl
from jax.experimental.pallas import tpu as pltpu


def mha_kernel(q_ref, k_ref, v_ref,
               wq_ref, bq_ref, wk_ref, bk_ref, wv_ref, bv_ref,
               wot_ref, bo_ref,
               o_ref,
               k_proj, v_proj, ctx_vmem,
               *, h, d_k):
    # q_ref: (1, tq, D) bf16; k_ref/v_ref: (1, S, D) bf16 (block constant over qi)
    # wq/wk/wv: (h, D, d_k) bf16; bq/bk/bv: (h, 1, d_k) f32
    # wot: (D, D) bf16 (input dim first); bo: (1, D) f32
    # scratch: k_proj/v_proj (h, S, d_k) bf16, ctx_vmem (tq, D) bf16
    qi = pl.program_id(1)

    # --- K/V projections: once per batch element, reused across query tiles.
    @pl.when(qi == 0)
    def _():
        kx = k_ref[0]                                         # (S, D) bf16
        vx = v_ref[0]
        for hi in range(h):                                   # h static -> unrolled
            kh = (jnp.dot(kx, wk_ref[hi],
                          preferred_element_type=jnp.float32) + bk_ref[hi])
            vh = (jnp.dot(vx, wv_ref[hi],
                          preferred_element_type=jnp.float32) + bv_ref[hi])
            k_proj[hi] = kh.astype(k_proj.dtype)              # (S, d_k) bf16
            v_proj[hi] = vh.astype(v_proj.dtype)

    q = q_ref[0]                                              # (tq, D) bf16
    dn = (((1,), (1,)), ((), ()))                             # Qh @ Kh^T, no relayout

    for hi in range(h):
        lo = hi * d_k
        # Per-head query projection (1/sqrt(d_k) folded into wq/bq).
        qh = (jnp.dot(q, wq_ref[hi],
                      preferred_element_type=jnp.float32) + bq_ref[hi]
              ).astype(jnp.bfloat16)                          # (tq, d_k)
        kh = k_proj[hi]                                       # (S, d_k) bf16
        vh = v_proj[hi]                                       # (S, d_k) bf16

        # scores = Q_h @ K_h^T, as a last-dim contraction (no in-kernel .T).
        s = lax.dot_general(qh, kh, dn,
                            preferred_element_type=jnp.float32)   # (tq, S) f32
        s = s - jnp.max(s, axis=-1, keepdims=True)
        p = jnp.exp(s)
        p = p * pl.reciprocal(jnp.sum(p, axis=-1, keepdims=True), approx=True)

        ctx = jnp.dot(p.astype(jnp.bfloat16), vh,
                      preferred_element_type=jnp.float32)         # (tq, d_k) f32
        # Head concat via lane-offset store into VMEM scratch; the output
        # projection below is a single depth-D contraction.
        ctx_vmem[:, lo:lo + d_k] = ctx.astype(ctx_vmem.dtype)

    out = (jnp.dot(ctx_vmem[...], wot_ref[...],
                   preferred_element_type=jnp.float32) + bo_ref[...])
    o_ref[0] = out.astype(o_ref.dtype)


def multi_head_attention(q, k, v, params, *, h, q_tile=None):
    B, S, D = q.shape
    assert D % h == 0, "d_model is not divisible by h"
    d_k = D // h
    wq, bq, wk, bk, wv, bv, wo, bo = params

    # ---- one-time parameter transforms (weight-load time in a real model) ----
    scale = 1.0 / math.sqrt(d_k)

    def split_heads(w_t):                      # (D_in, D_out) -> (h, D_in, d_k)
        return w_t.reshape(D, h, d_k).transpose(1, 0, 2)

    wq_h = split_heads(wq.T * scale).astype(jnp.bfloat16)
    wk_h = split_heads(wk.T).astype(jnp.bfloat16)
    wv_h = split_heads(wv.T).astype(jnp.bfloat16)
    wo_t = wo.T.astype(jnp.bfloat16)                           # (D_in, D_out)
    bq_h = (bq * scale).reshape(h, 1, d_k).astype(jnp.float32)
    bk_h = bk.reshape(h, 1, d_k).astype(jnp.float32)
    bv_h = bv.reshape(h, 1, d_k).astype(jnp.float32)
    bo_2 = bo.reshape(1, D).astype(jnp.float32)

    # bf16 activations into the kernel; f32 accumulation inside; f32 (input
    # dtype) output.
    q_bf = q.astype(jnp.bfloat16)
    k_bf = k.astype(jnp.bfloat16)
    v_bf = v.astype(jnp.bfloat16)

    # ---- query-sequence tiling (inner, "arbitrary" grid axis) ----
    tq = q_tile if q_tile is not None else min(S, 256)
    assert S % tq == 0, "seq_len must be divisible by the query tile"
    assert tq == S or tq % 16 == 0, "bf16 query tile must be a multiple of 16"
    n_q = S // tq

    q_spec   = pl.BlockSpec((1, tq, D), lambda b, qi: (b, qi, 0))
    kv_spec  = pl.BlockSpec((1, S, D), lambda b, qi: (b, 0, 0))
    wh_spec  = pl.BlockSpec((h, D, d_k), lambda b, qi: (0, 0, 0))
    bh_spec  = pl.BlockSpec((h, 1, d_k), lambda b, qi: (0, 0, 0))
    wo_spec  = pl.BlockSpec((D, D), lambda b, qi: (0, 0))
    bo_spec  = pl.BlockSpec((1, D), lambda b, qi: (0, 0))
    out_spec = pl.BlockSpec((1, tq, D), lambda b, qi: (b, qi, 0))

    # Advisory cost estimate for the XLA scheduler (K/V projected once/batch).
    flops = B * (8 * S * D * D + 4 * S * S * D)
    transcendentals = B * h * S * S
    bytes_accessed = 2 * 3 * B * S * D + 4 * B * S * D + 2 * 4 * D * D + 4 * 4 * D

    kernel = functools.partial(mha_kernel, h=h, d_k=d_k)
    return pl.pallas_call(
        kernel,
        out_shape=jax.ShapeDtypeStruct((B, S, D), q.dtype),
        grid=(B, n_q),
        in_specs=[q_spec, kv_spec, kv_spec,
                  wh_spec, bh_spec, wh_spec, bh_spec, wh_spec, bh_spec,
                  wo_spec, bo_spec],
        out_specs=out_spec,
        scratch_shapes=[pltpu.VMEM((h, S, d_k), jnp.bfloat16),   # projected K
                        pltpu.VMEM((h, S, d_k), jnp.bfloat16),   # projected V
                        pltpu.VMEM((tq, D), jnp.bfloat16)],      # head-concat ctx
        compiler_params=pltpu.CompilerParams(
            dimension_semantics=("parallel", "arbitrary"),
            vmem_limit_bytes=48 * 1024 * 1024),
        cost_estimate=pl.CostEstimate(
            flops=flops,
            transcendentals=transcendentals,
            bytes_accessed=bytes_accessed),
    )(q_bf, k_bf, v_bf, wq_h, bq_h, wk_h, bk_h, wv_h, bv_h, wo_t, bo_2)


def _reference(q, k, v, params, *, h):
    """Pure-JAX f32 reference mirroring the PyTorch forward (mask=None, eval)."""
    B, S, D = q.shape
    d_k = D // h
    wq, bq, wk, bk, wv, bv, wo, bo = params
    Q = q @ wq.T + bq
    K = k @ wk.T + bk
    V = v @ wv.T + bv
    Q = Q.reshape(B, S, h, d_k).transpose(0, 2, 1, 3)
    K = K.reshape(B, S, h, d_k).transpose(0, 2, 1, 3)
    V = V.reshape(B, S, h, d_k).transpose(0, 2, 1, 3)
    s = jnp.einsum('bhqd,bhkd->bhqk', Q, K) / math.sqrt(d_k)
    p = jax.nn.softmax(s, axis=-1)
    x = jnp.einsum('bhqk,bhkd->bhqd', p, V)
    x = x.transpose(0, 2, 1, 3).reshape(B, S, D)
    return x @ wo.T + bo


if __name__ == "__main__":
    # batch=2, seq=32, d_model=32, heads=4 (d_k=8); q_tile=16 -> 2 query tiles
    # per batch so the scratch-carried K/V path (qi > 0) is exercised.
    B, S, D, H = 2, 32, 32, 4

    key = jax.random.PRNGKey(0)
    keys = jax.random.split(key, 11)
    bound = 1.0 / math.sqrt(D)   # PyTorch nn.Linear default init range
    wq = jax.random.uniform(keys[0], (D, D), jnp.float32, -bound, bound)
    bq = jax.random.uniform(keys[1], (D,), jnp.float32, -bound, bound)
    wk = jax.random.uniform(keys[2], (D, D), jnp.float32, -bound, bound)
    bk = jax.random.uniform(keys[3], (D,), jnp.float32, -bound, bound)
    wv = jax.random.uniform(keys[4], (D, D), jnp.float32, -bound, bound)
    bv = jax.random.uniform(keys[5], (D,), jnp.float32, -bound, bound)
    wo = jax.random.uniform(keys[6], (D, D), jnp.float32, -bound, bound)
    bo = jax.random.uniform(keys[7], (D,), jnp.float32, -bound, bound)
    params = (wq, bq, wk, bk, wv, bv, wo, bo)

    q = jax.random.normal(keys[8], (B, S, D), jnp.float32)
    k = jax.random.normal(keys[9], (B, S, D), jnp.float32)
    v = jax.random.normal(keys[10], (B, S, D), jnp.float32)

    out = multi_head_attention(q, k, v, params, h=H, q_tile=16)
    out = jax.block_until_ready(out)

    ref = _reference(q, k, v, params, h=H)
    assert out.shape == (B, S, D)
    # Tolerance widened: MXU operands are bf16 (f32 accumulation) and the
    # softmax denominator uses the approximate EUP reciprocal.
    assert jnp.allclose(out, ref, atol=2e-2, rtol=2e-2), "mismatch vs reference"

    print("KERNEL_OK")
</pallas_src>

<mosaic_0001>
module attributes {stable_mosaic.version = 11 : i64} {
  func.func @mha_kernel(%arg0: i32, %arg1: i32, %arg2: memref<1x16x32xbf16, #tpu.memory_space<vmem>>, %arg3: memref<1x32x32xbf16, #tpu.memory_space<vmem>>, %arg4: memref<1x32x32xbf16, #tpu.memory_space<vmem>>, %arg5: memref<4x32x8xbf16, #tpu.memory_space<vmem>>, %arg6: memref<4x1x8xf32, #tpu.memory_space<vmem>>, %arg7: memref<4x32x8xbf16, #tpu.memory_space<vmem>>, %arg8: memref<4x1x8xf32, #tpu.memory_space<vmem>>, %arg9: memref<4x32x8xbf16, #tpu.memory_space<vmem>>, %arg10: memref<4x1x8xf32, #tpu.memory_space<vmem>>, %arg11: memref<32x32xbf16, #tpu.memory_space<vmem>>, %arg12: memref<1x32xf32, #tpu.memory_space<vmem>>, %arg13: memref<1x16x32xf32, #tpu.memory_space<vmem>>, %arg14: memref<4x32x8xbf16, #tpu.memory_space<vmem>>, %arg15: memref<4x32x8xbf16, #tpu.memory_space<vmem>>, %arg16: memref<16x32xbf16, #tpu.memory_space<vmem>>) attributes {dimension_semantics = [#tpu.dimension_semantics<parallel>, #tpu.dimension_semantics<arbitrary>], iteration_bounds = array<i64: 2, 2>, scalar_prefetch = 0 : i64, scratch_operands = 3 : i64, tpu.core_type = #tpu.core_type<tc>, window_params = [{transform_indices = @transform_0, window_bounds = array<i64: 1, 16, 32>}, {transform_indices = @transform_1, window_bounds = array<i64: 1, 32, 32>}, {transform_indices = @transform_2, window_bounds = array<i64: 1, 32, 32>}, {pipeline_mode = #tpu.pipeline_mode<synchronous>, transform_indices = @transform_3, window_bounds = array<i64: 4, 32, 8>}, {pipeline_mode = #tpu.pipeline_mode<synchronous>, transform_indices = @transform_4, window_bounds = array<i64: 4, 1, 8>}, {pipeline_mode = #tpu.pipeline_mode<synchronous>, transform_indices = @transform_5, window_bounds = array<i64: 4, 32, 8>}, {pipeline_mode = #tpu.pipeline_mode<synchronous>, transform_indices = @transform_6, window_bounds = array<i64: 4, 1, 8>}, {pipeline_mode = #tpu.pipeline_mode<synchronous>, transform_indices = @transform_7, window_bounds = array<i64: 4, 32, 8>}, {pipeline_mode = #tpu.pipeline_mode<synchronous>, transform_indices = @transform_8, window_bounds = array<i64: 4, 1, 8>}, {pipeline_mode = #tpu.pipeline_mode<synchronous>, transform_indices = @transform_9, window_bounds = array<i64: 32, 32>}, {pipeline_mode = #tpu.pipeline_mode<synchronous>, transform_indices = @transform_10, window_bounds = array<i64: 1, 32>}, {transform_indices = @transform_11, window_bounds = array<i64: 1, 16, 32>}]} {
    %c0_i32 = arith.constant 0 : i32
    %0 = arith.cmpi eq, %arg1, %c0_i32 : i32
    %1 = arith.extui %0 : i1 to i32
    %c0_i32_0 = arith.constant 0 : i32
    %2 = arith.cmpi ne, %1, %c0_i32_0 : i32
    scf.if %2 {
      %c0_82 = arith.constant 0 : index
      %c0_83 = arith.constant 0 : index
      %c0_84 = arith.constant 0 : index
      %122 = vector.load %arg3[%c0_82, %c0_83, %c0_84] : memref<1x32x32xbf16, #tpu.memory_space<vmem>>, vector<1x32x32xbf16>
      %123 = vector.shape_cast %122 : vector<1x32x32xbf16> to vector<32x32xbf16>
      %c0_85 = arith.constant 0 : index
      %c0_86 = arith.constant 0 : index
      %c0_87 = arith.constant 0 : index
      %124 = vector.load %arg4[%c0_85, %c0_86, %c0_87] : memref<1x32x32xbf16, #tpu.memory_space<vmem>>, vector<1x32x32xbf16>
      %125 = vector.shape_cast %124 : vector<1x32x32xbf16> to vector<32x32xbf16>
      %c0_88 = arith.constant 0 : index
      %c0_89 = arith.constant 0 : index
      %c0_90 = arith.constant 0 : index
      %126 = vector.load %arg7[%c0_88, %c0_89, %c0_90] : memref<4x32x8xbf16, #tpu.memory_space<vmem>>, vector<1x32x8xbf16>
      %127 = vector.shape_cast %126 : vector<1x32x8xbf16> to vector<32x8xbf16>
      %cst_91 = arith.constant dense<0.000000e+00> : vector<32x8xf32>
      %128 = tpu.matmul %123, %127, %cst_91 {dimension_numbers = #tpu.dot_dimension_numbers<[1], [0], [0], [1], [0, 0, 1, 1], [], []>} : vector<32x32xbf16>, vector<32x8xbf16>, vector<32x8xf32> -> vector<32x8xf32>
      %c0_92 = arith.constant 0 : index
      %c0_93 = arith.constant 0 : index
      %c0_94 = arith.constant 0 : index
      %129 = vector.load %arg8[%c0_92, %c0_93, %c0_94] : memref<4x1x8xf32, #tpu.memory_space<vmem>>, vector<1x1x8xf32>
      %130 = vector.shape_cast %129 : vector<1x1x8xf32> to vector<1x8xf32>
      %131 = vector.broadcast %130 : vector<1x8xf32> to vector<32x8xf32>
      %132 = arith.addf %128, %131 : vector<32x8xf32>
      %c0_95 = arith.constant 0 : index
      %c0_96 = arith.constant 0 : index
      %c0_97 = arith.constant 0 : index
      %133 = vector.load %arg9[%c0_95, %c0_96, %c0_97] : memref<4x32x8xbf16, #tpu.memory_space<vmem>>, vector<1x32x8xbf16>
      %134 = vector.shape_cast %133 : vector<1x32x8xbf16> to vector<32x8xbf16>
      %cst_98 = arith.constant dense<0.000000e+00> : vector<32x8xf32>
      %135 = tpu.matmul %125, %134, %cst_98 {dimension_numbers = #tpu.dot_dimension_numbers<[1], [0], [0], [1], [0, 0, 1, 1], [], []>} : vector<32x32xbf16>, vector<32x8xbf16>, vector<32x8xf32> -> vector<32x8xf32>
      %c0_99 = arith.constant 0 : index
      %c0_100 = arith.constant 0 : index
      %c0_101 = arith.constant 0 : index
      %136 = vector.load %arg10[%c0_99, %c0_100, %c0_101] : memref<4x1x8xf32, #tpu.memory_space<vmem>>, vector<1x1x8xf32>
      %137 = vector.shape_cast %136 : vector<1x1x8xf32> to vector<1x8xf32>
      %138 = vector.broadcast %137 : vector<1x8xf32> to vector<32x8xf32>
      %139 = arith.addf %135, %138 : vector<32x8xf32>
      %140 = arith.truncf %132 : vector<32x8xf32> to vector<32x8xbf16>
      %c0_102 = arith.constant 0 : index
      %c0_103 = arith.constant 0 : index
      %c0_104 = arith.constant 0 : index
      %141 = vector.load %arg14[%c0_102, %c0_103, %c0_104] : memref<4x32x8xbf16, #tpu.memory_space<vmem>>, vector<1x32x8xbf16>
      %142 = vector.shape_cast %141 : vector<1x32x8xbf16> to vector<32x8xbf16>
      %143 = vector.shape_cast %140 : vector<32x8xbf16> to vector<1x32x8xbf16>
      tpu.vector_store %arg14[%c0_102, %c0_103, %c0_104], %143 {strides = array<i32>} : memref<4x32x8xbf16, #tpu.memory_space<vmem>>, vector<1x32x8xbf16>,
      %144 = arith.truncf %139 : vector<32x8xf32> to vector<32x8xbf16>
      %c0_105 = arith.constant 0 : index
      %c0_106 = arith.constant 0 : index
      %c0_107 = arith.constant 0 : index
      %145 = vector.load %arg15[%c0_105, %c0_106, %c0_107] : memref<4x32x8xbf16, #tpu.memory_space<vmem>>, vector<1x32x8xbf16>
      %146 = vector.shape_cast %145 : vector<1x32x8xbf16> to vector<32x8xbf16>
      %147 = vector.shape_cast %144 : vector<32x8xbf16> to vector<1x32x8xbf16>
      tpu.vector_store %arg15[%c0_105, %c0_106, %c0_107], %147 {strides = array<i32>} : memref<4x32x8xbf16, #tpu.memory_space<vmem>>, vector<1x32x8xbf16>,
      %c1_108 = arith.constant 1 : index
      %c0_109 = arith.constant 0 : index
      %c0_110 = arith.constant 0 : index
      %148 = vector.load %arg7[%c1_108, %c0_109, %c0_110] : memref<4x32x8xbf16, #tpu.memory_space<vmem>>, vector<1x32x8xbf16>
      %149 = vector.shape_cast %148 : vector<1x32x8xbf16> to vector<32x8xbf16>
      %cst_111 = arith.constant dense<0.000000e+00> : vector<32x8xf32>
      %150 = tpu.matmul %123, %149, %cst_111 {dimension_numbers = #tpu.dot_dimension_numbers<[1], [0], [0], [1], [0, 0, 1, 1], [], []>} : vector<32x32xbf16>, vector<32x8xbf16>, vector<32x8xf32> -> vector<32x8xf32>
      %c1_112 = arith.constant 1 : index
      %c0_113 = arith.constant 0 : index
      %c0_114 = arith.constant 0 : index
      %151 = vector.load %arg8[%c1_112, %c0_113, %c0_114] : memref<4x1x8xf32, #tpu.memory_space<vmem>>, vector<1x1x8xf32>
      %152 = vector.shape_cast %151 : vector<1x1x8xf32> to vector<1x8xf32>
      %153 = vector.broadcast %152 : vector<1x8xf32> to vector<32x8xf32>
      %154 = arith.addf %150, %153 : vector<32x8xf32>
      %c1_115 = arith.constant 1 : index
      %c0_116 = arith.constant 0 : index
      %c0_117 = arith.constant 0 : index
      %155 = vector.load %arg9[%c1_115, %c0_116, %c0_117] : memref<4x32x8xbf16, #tpu.memory_space<vmem>>, vector<1x32x8xbf16>
      %156 = vector.shape_cast %155 : vector<1x32x8xbf16> to vector<32x8xbf16>
      %cst_118 = arith.constant dense<0.000000e+00> : vector<32x8xf32>
      %157 = tpu.matmul %125, %156, %cst_118 {dimension_numbers = #tpu.dot_dimension_numbers<[1], [0], [0], [1], [0, 0, 1, 1], [], []>} : vector<32x32xbf16>, vector<32x8xbf16>, vector<32x8xf32> -> vector<32x8xf32>
      %c1_119 = arith.constant 1 : index
      %c0_120 = arith.constant 0 : index
      %c0_121 = arith.constant 0 : index
      %158 = vector.load %arg10[%c1_119, %c0_120, %c0_121] : memref<4x1x8xf32, #tpu.memory_space<vmem>>, vector<1x1x8xf32>
      %159 = vector.shape_cast %158 : vector<1x1x8xf32> to vector<1x8xf32>
      %160 = vector.broadcast %159 : vector<1x8xf32> to vector<32x8xf32>
      %161 = arith.addf %157, %160 : vector<32x8xf32>
      %162 = arith.truncf %154 : vector<32x8xf32> to vector<32x8xbf16>
      %c1_122 = arith.constant 1 : index
      %c0_123 = arith.constant 0 : index
      %c0_124 = arith.constant 0 : index
      %163 = vector.load %arg14[%c1_122, %c0_123, %c0_124] : memref<4x32x8xbf16, #tpu.memory_space<vmem>>, vector<1x32x8xbf16>
      %164 = vector.shape_cast %163 : vector<1x32x8xbf16> to vector<32x8xbf16>
      %165 = vector.shape_cast %162 : vector<32x8xbf16> to vector<1x32x8xbf16>
      tpu.vector_store %arg14[%c1_122, %c0_123, %c0_124], %165 {strides = array<i32>} : memref<4x32x8xbf16, #tpu.memory_space<vmem>>, vector<1x32x8xbf16>,
      %166 = arith.truncf %161 : vector<32x8xf32> to vector<32x8xbf16>
      %c1_125 = arith.constant 1 : index
      %c0_126 = arith.constant 0 : index
      %c0_127 = arith.constant 0 : index
      %167 = vector.load %arg15[%c1_125, %c0_126, %c0_127] : memref<4x32x8xbf16, #tpu.memory_space<vmem>>, vector<1x32x8xbf16>
      %168 = vector.shape_cast %167 : vector<1x32x8xbf16> to vector<32x8xbf16>
      %169 = vector.shape_cast %166 : vector<32x8xbf16> to vector<1x32x8xbf16>
      tpu.vector_store %arg15[%c1_125, %c0_126, %c0_127], %169 {strides = array<i32>} : memref<4x32x8xbf16, #tpu.memory_space<vmem>>, vector<1x32x8xbf16>,
      %c2_128 = arith.constant 2 : index
      %c0_129 = arith.constant 0 : index
      %c0_130 = arith.constant 0 : index
      %170 = vector.load %arg7[%c2_128, %c0_129, %c0_130] : memref<4x32x8xbf16, #tpu.memory_space<vmem>>, vector<1x32x8xbf16>
      %171 = vector.shape_cast %170 : vector<1x32x8xbf16> to vector<32x8xbf16>
      %cst_131 = arith.constant dense<0.000000e+00> : vector<32x8xf32>
      %172 = tpu.matmul %123, %171, %cst_131 {dimension_numbers = #tpu.dot_dimension_numbers<[1], [0], [0], [1], [0, 0, 1, 1], [], []>} : vector<32x32xbf16>, vector<32x8xbf16>, vector<32x8xf32> -> vector<32x8xf32>
      %c2_132 = arith.constant 2 : index
      %c0_133 = arith.constant 0 : index
      %c0_134 = arith.constant 0 : index
      %173 = vector.load %arg8[%c2_132, %c0_133, %c0_134] : memref<4x1x8xf32, #tpu.memory_space<vmem>>, vector<1x1x8xf32>
      %174 = vector.shape_cast %173 : vector<1x1x8xf32> to vector<1x8xf32>
      %175 = vector.broadcast %174 : vector<1x8xf32> to vector<32x8xf32>
      %176 = arith.addf %172, %175 : vector<32x8xf32>
      %c2_135 = arith.constant 2 : index
      %c0_136 = arith.constant 0 : index
      %c0_137 = arith.constant 0 : index
      %177 = vector.load %arg9[%c2_135, %c0_136, %c0_137] : memref<4x32x8xbf16, #tpu.memory_space<vmem>>, vector<1x32x8xbf16>
      %178 = vector.shape_cast %177 : vector<1x32x8xbf16> to vector<32x8xbf16>
      %cst_138 = arith.constant dense<0.000000e+00> : vector<32x8xf32>
      %179 = tpu.matmul %125, %178, %cst_138 {dimension_numbers = #tpu.dot_dimension_numbers<[1], [0], [0], [1], [0, 0, 1, 1], [], []>} : vector<32x32xbf16>, vector<32x8xbf16>, vector<32x8xf32> -> vector<32x8xf32>
      %c2_139 = arith.constant 2 : index
      %c0_140 = arith.constant 0 : index
      %c0_141 = arith.constant 0 : index
      %180 = vector.load %arg10[%c2_139, %c0_140, %c0_141] : memref<4x1x8xf32, #tpu.memory_space<vmem>>, vector<1x1x8xf32>
      %181 = vector.shape_cast %180 : vector<1x1x8xf32> to vector<1x8xf32>
      %182 = vector.broadcast %181 : vector<1x8xf32> to vector<32x8xf32>
      %183 = arith.addf %179, %182 : vector<32x8xf32>
      %184 = arith.truncf %176 : vector<32x8xf32> to vector<32x8xbf16>
      %c2_142 = arith.constant 2 : index
      %c0_143 = arith.constant 0 : index
      %c0_144 = arith.constant 0 : index
      %185 = vector.load %arg14[%c2_142, %c0_143, %c0_144] : memref<4x32x8xbf16, #tpu.memory_space<vmem>>, vector<1x32x8xbf16>
      %186 = vector.shape_cast %185 : vector<1x32x8xbf16> to vector<32x8xbf16>
      %187 = vector.shape_cast %184 : vector<32x8xbf16> to vector<1x32x8xbf16>
      tpu.vector_store %arg14[%c2_142, %c0_143, %c0_144], %187 {strides = array<i32>} : memref<4x32x8xbf16, #tpu.memory_space<vmem>>, vector<1x32x8xbf16>,
      %188 = arith.truncf %183 : vector<32x8xf32> to vector<32x8xbf16>
      %c2_145 = arith.constant 2 : index
      %c0_146 = arith.constant 0 : index
      %c0_147 = arith.constant 0 : index
      %189 = vector.load %arg15[%c2_145, %c0_146, %c0_147] : memref<4x32x8xbf16, #tpu.memory_space<vmem>>, vector<1x32x8xbf16>
      %190 = vector.shape_cast %189 : vector<1x32x8xbf16> to vector<32x8xbf16>
      %191 = vector.shape_cast %188 : vector<32x8xbf16> to vector<1x32x8xbf16>
      tpu.vector_store %arg15[%c2_145, %c0_146, %c0_147], %191 {strides = array<i32>} : memref<4x32x8xbf16, #tpu.memory_space<vmem>>, vector<1x32x8xbf16>,
      %c3_148 = arith.constant 3 : index
      %c0_149 = arith.constant 0 : index
      %c0_150 = arith.constant 0 : index
      %192 = vector.load %arg7[%c3_148, %c0_149, %c0_150] : memref<4x32x8xbf16, #tpu.memory_space<vmem>>, vector<1x32x8xbf16>
      %193 = vector.shape_cast %192 : vector<1x32x8xbf16> to vector<32x8xbf16>
      %cst_151 = arith.constant dense<0.000000e+00> : vector<32x8xf32>
      %194 = tpu.matmul %123, %193, %cst_151 {dimension_numbers = #tpu.dot_dimension_numbers<[1], [0], [0], [1], [0, 0, 1, 1], [], []>} : vector<32x32xbf16>, vector<32x8xbf16>, vector<32x8xf32> -> vector<32x8xf32>
      %c3_152 = arith.constant 3 : index
      %c0_153 = arith.constant 0 : index
      %c0_154 = arith.constant 0 : index
      %195 = vector.load %arg8[%c3_152, %c0_153, %c0_154] : memref<4x1x8xf32, #tpu.memory_space<vmem>>, vector<1x1x8xf32>
      %196 = vector.shape_cast %195 : vector<1x1x8xf32> to vector<1x8xf32>
      %197 = vector.broadcast %196 : vector<1x8xf32> to vector<32x8xf32>
      %198 = arith.addf %194, %197 : vector<32x8xf32>
      %c3_155 = arith.constant 3 : index
      %c0_156 = arith.constant 0 : index
      %c0_157 = arith.constant 0 : index
      %199 = vector.load %arg9[%c3_155, %c0_156, %c0_157] : memref<4x32x8xbf16, #tpu.memory_space<vmem>>, vector<1x32x8xbf16>
      %200 = vector.shape_cast %199 : vector<1x32x8xbf16> to vector<32x8xbf16>
      %cst_158 = arith.constant dense<0.000000e+00> : vector<32x8xf32>
      %201 = tpu.matmul %125, %200, %cst_158 {dimension_numbers = #tpu.dot_dimension_numbers<[1], [0], [0], [1], [0, 0, 1, 1], [], []>} : vector<32x32xbf16>, vector<32x8xbf16>, vector<32x8xf32> -> vector<32x8xf32>
      %c3_159 = arith.constant 3 : index
      %c0_160 = arith.constant 0 : index
      %c0_161 = arith.constant 0 : index
      %202 = vector.load %arg10[%c3_159, %c0_160, %c0_161] : memref<4x1x8xf32, #tpu.memory_space<vmem>>, vector<1x1x8xf32>
      %203 = vector.shape_cast %202 : vector<1x1x8xf32> to vector<1x8xf32>
      %204 = vector.broadcast %203 : vector<1x8xf32> to vector<32x8xf32>
      %205 = arith.addf %201, %204 : vector<32x8xf32>
      %206 = arith.truncf %198 : vector<32x8xf32> to vector<32x8xbf16>
      %c3_162 = arith.constant 3 : index
      %c0_163 = arith.constant 0 : index
      %c0_164 = arith.constant 0 : index
      %207 = vector.load %arg14[%c3_162, %c0_163, %c0_164] : memref<4x32x8xbf16, #tpu.memory_space<vmem>>, vector<1x32x8xbf16>
      %208 = vector.shape_cast %207 : vector<1x32x8xbf16> to vector<32x8xbf16>
      %209 = vector.shape_cast %206 : vector<32x8xbf16> to vector<1x32x8xbf16>
      tpu.vector_store %arg14[%c3_162, %c0_163, %c0_164], %209 {strides = array<i32>} : memref<4x32x8xbf16, #tpu.memory_space<vmem>>, vector<1x32x8xbf16>,
      %210 = arith.truncf %205 : vector<32x8xf32> to vector<32x8xbf16>
      %c3_165 = arith.constant 3 : index
      %c0_166 = arith.constant 0 : index
      %c0_167 = arith.constant 0 : index
      %211 = vector.load %arg15[%c3_165, %c0_166, %c0_167] : memref<4x32x8xbf16, #tpu.memory_space<vmem>>, vector<1x32x8xbf16>
      %212 = vector.shape_cast %211 : vector<1x32x8xbf16> to vector<32x8xbf16>
      %213 = vector.shape_cast %210 : vector<32x8xbf16> to vector<1x32x8xbf16>
      tpu.vector_store %arg15[%c3_165, %c0_166, %c0_167], %213 {strides = array<i32>} : memref<4x32x8xbf16, #tpu.memory_space<vmem>>, vector<1x32x8xbf16>,
    } else {
    }
    %c0 = arith.constant 0 : index
    %c0_1 = arith.constant 0 : index
    %c0_2 = arith.constant 0 : index
    %3 = vector.load %arg2[%c0, %c0_1, %c0_2] : memref<1x16x32xbf16, #tpu.memory_space<vmem>>, vector<1x16x32xbf16>
    %4 = vector.shape_cast %3 : vector<1x16x32xbf16> to vector<16x32xbf16>
    %c0_3 = arith.constant 0 : index
    %c0_4 = arith.constant 0 : index
    %c0_5 = arith.constant 0 : index
    %5 = vector.load %arg5[%c0_3, %c0_4, %c0_5] : memref<4x32x8xbf16, #tpu.memory_space<vmem>>, vector<1x32x8xbf16>
    %6 = vector.shape_cast %5 : vector<1x32x8xbf16> to vector<32x8xbf16>
    %cst = arith.constant dense<0.000000e+00> : vector<16x8xf32>
    %7 = tpu.matmul %4, %6, %cst {dimension_numbers = #tpu.dot_dimension_numbers<[1], [0], [0], [1], [0, 0, 1, 1], [], []>} : vector<16x32xbf16>, vector<32x8xbf16>, vector<16x8xf32> -> vector<16x8xf32>
    %c0_6 = arith.constant 0 : index
    %c0_7 = arith.constant 0 : index
    %c0_8 = arith.constant 0 : index
    %8 = vector.load %arg6[%c0_6, %c0_7, %c0_8] : memref<4x1x8xf32, #tpu.memory_space<vmem>>, vector<1x1x8xf32>
    %9 = vector.shape_cast %8 : vector<1x1x8xf32> to vector<1x8xf32>
    %10 = vector.broadcast %9 : vector<1x8xf32> to vector<16x8xf32>
    %11 = arith.addf %7, %10 : vector<16x8xf32>
    %12 = arith.truncf %11 : vector<16x8xf32> to vector<16x8xbf16>
    %c0_9 = arith.constant 0 : index
    %c0_10 = arith.constant 0 : index
    %c0_11 = arith.constant 0 : index
    %13 = vector.load %arg14[%c0_9, %c0_10, %c0_11] : memref<4x32x8xbf16, #tpu.memory_space<vmem>>, vector<1x32x8xbf16>
    %14 = vector.shape_cast %13 : vector<1x32x8xbf16> to vector<32x8xbf16>
    %c0_12 = arith.constant 0 : index
    %c0_13 = arith.constant 0 : index
    %c0_14 = arith.constant 0 : index
    %15 = vector.load %arg15[%c0_12, %c0_13, %c0_14] : memref<4x32x8xbf16, #tpu.memory_space<vmem>>, vector<1x32x8xbf16>
    %16 = vector.shape_cast %15 : vector<1x32x8xbf16> to vector<32x8xbf16>
    %cst_15 = arith.constant dense<0.000000e+00> : vector<16x32xf32>
    %17 = tpu.matmul %12, %14, %cst_15 {dimension_numbers = #tpu.dot_dimension_numbers<[1], [1], [0], [0], [0, 0, 1, 0], [], []>} : vector<16x8xbf16>, vector<32x8xbf16>, vector<16x32xf32> -> vector<16x32xf32>
    %cst_16 = arith.constant dense<0xFF800000> : vector<16xf32>
    %18 = vector.multi_reduction <maximumf>, %17, %cst_16 [1] : vector<16x32xf32> to vector<16xf32>
    %19 = vector.shape_cast %18 : vector<16xf32> to vector<16x1xf32>
    %20 = vector.broadcast %19 : vector<16x1xf32> to vector<16x32xf32>
    %21 = arith.subf %17, %20 : vector<16x32xf32>
    %22 = math.exp %21 : vector<16x32xf32>
    %cst_17 = arith.constant dense<0.000000e+00> : vector<16xf32>
    %23 = vector.multi_reduction <add>, %22, %cst_17 [1] : vector<16x32xf32> to vector<16xf32>
    %24 = vector.shape_cast %23 : vector<16xf32> to vector<16x1xf32>
    %25 = tpu.reciprocal %24 {approx = true} : vector<16x1xf32> -> vector<16x1xf32>
    %26 = vector.broadcast %25 : vector<16x1xf32> to vector<16x32xf32>
    %27 = arith.mulf %22, %26 : vector<16x32xf32>
    %28 = arith.truncf %27 : vector<16x32xf32> to vector<16x32xbf16>
    %cst_18 = arith.constant dense<0.000000e+00> : vector<16x8xf32>
    %29 = tpu.matmul %28, %16, %cst_18 {dimension_numbers = #tpu.dot_dimension_numbers<[1], [0], [0], [1], [0, 0, 1, 1], [], []>} : vector<16x32xbf16>, vector<32x8xbf16>, vector<16x8xf32> -> vector<16x8xf32>
    %30 = arith.truncf %29 : vector<16x8xf32> to vector<16x8xbf16>
    %c0_19 = arith.constant 0 : index
    %c0_20 = arith.constant 0 : index
    %31 = vector.load %arg16[%c0_19, %c0_20] : memref<16x32xbf16, #tpu.memory_space<vmem>>, vector<16x8xbf16>
    tpu.vector_store %arg16[%c0_19, %c0_20], %30 {strides = array<i32>} : memref<16x32xbf16, #tpu.memory_space<vmem>>, vector<16x8xbf16>,
    %c1 = arith.constant 1 : index
    %c0_21 = arith.constant 0 : index
    %c0_22 = arith.constant 0 : index
    %32 = vector.load %arg5[%c1, %c0_21, %c0_22] : memref<4x32x8xbf16, #tpu.memory_space<vmem>>, vector<1x32x8xbf16>
    %33 = vector.shape_cast %32 : vector<1x32x8xbf16> to vector<32x8xbf16>
    %cst_23 = arith.constant dense<0.000000e+00> : vector<16x8xf32>
    %34 = tpu.matmul %4, %33, %cst_23 {dimension_numbers = #tpu.dot_dimension_numbers<[1], [0], [0], [1], [0, 0, 1, 1], [], []>} : vector<16x32xbf16>, vector<32x8xbf16>, vector<16x8xf32> -> vector<16x8xf32>
    %c1_24 = arith.constant 1 : index
    %c0_25 = arith.constant 0 : index
    %c0_26 = arith.constant 0 : index
    %35 = vector.load %arg6[%c1_24, %c0_25, %c0_26] : memref<4x1x8xf32, #tpu.memory_space<vmem>>, vector<1x1x8xf32>
    %36 = vector.shape_cast %35 : vector<1x1x8xf32> to vector<1x8xf32>
    %37 = vector.broadcast %36 : vector<1x8xf32> to vector<16x8xf32>
    %38 = arith.addf %34, %37 : vector<16x8xf32>
    %39 = arith.truncf %38 : vector<16x8xf32> to vector<16x8xbf16>
    %c1_27 = arith.constant 1 : index
    %c0_28 = arith.constant 0 : index
    %c0_29 = arith.constant 0 : index
    %40 = vector.load %arg14[%c1_27, %c0_28, %c0_29] : memref<4x32x8xbf16, #tpu.memory_space<vmem>>, vector<1x32x8xbf16>
    %41 = vector.shape_cast %40 : vector<1x32x8xbf16> to vector<32x8xbf16>
    %c1_30 = arith.constant 1 : index
    %c0_31 = arith.constant 0 : index
    %c0_32 = arith.constant 0 : index
    %42 = vector.load %arg15[%c1_30, %c0_31, %c0_32] : memref<4x32x8xbf16, #tpu.memory_space<vmem>>, vector<1x32x8xbf16>
    %43 = vector.shape_cast %42 : vector<1x32x8xbf16> to vector<32x8xbf16>
    %cst_33 = arith.constant dense<0.000000e+00> : vector<16x32xf32>
    %44 = tpu.matmul %39, %41, %cst_33 {dimension_numbers = #tpu.dot_dimension_numbers<[1], [1], [0], [0], [0, 0, 1, 0], [], []>} : vector<16x8xbf16>, vector<32x8xbf16>, vector<16x32xf32> -> vector<16x32xf32>
    %cst_34 = arith.constant dense<0xFF800000> : vector<16xf32>
    %45 = vector.multi_reduction <maximumf>, %44, %cst_34 [1] : vector<16x32xf32> to vector<16xf32>
    %46 = vector.shape_cast %45 : vector<16xf32> to vector<16x1xf32>
    %47 = vector.broadcast %46 : vector<16x1xf32> to vector<16x32xf32>
    %48 = arith.subf %44, %47 : vector<16x32xf32>
    %49 = math.exp %48 : vector<16x32xf32>
    %cst_35 = arith.constant dense<0.000000e+00> : vector<16xf32>
    %50 = vector.multi_reduction <add>, %49, %cst_35 [1] : vector<16x32xf32> to vector<16xf32>
    %51 = vector.shape_cast %50 : vector<16xf32> to vector<16x1xf32>
    %52 = tpu.reciprocal %51 {approx = true} : vector<16x1xf32> -> vector<16x1xf32>
    %53 = vector.broadcast %52 : vector<16x1xf32> to vector<16x32xf32>
    %54 = arith.mulf %49, %53 : vector<16x32xf32>
    %55 = arith.truncf %54 : vector<16x32xf32> to vector<16x32xbf16>
    %cst_36 = arith.constant dense<0.000000e+00> : vector<16x8xf32>
    %56 = tpu.matmul %55, %43, %cst_36 {dimension_numbers = #tpu.dot_dimension_numbers<[1], [0], [0], [1], [0, 0, 1, 1], [], []>} : vector<16x32xbf16>, vector<32x8xbf16>, vector<16x8xf32> -> vector<16x8xf32>
    %57 = arith.truncf %56 : vector<16x8xf32> to vector<16x8xbf16>
    %c0_37 = arith.constant 0 : index
    %c8 = arith.constant 8 : index
    %58 = vector.load %arg16[%c0_37, %c8] : memref<16x32xbf16, #tpu.memory_space<vmem>>, vector<16x8xbf16>
    tpu.vector_store %arg16[%c0_37, %c8], %57 {strides = array<i32>} : memref<16x32xbf16, #tpu.memory_space<vmem>>, vector<16x8xbf16>,
    %c2 = arith.constant 2 : index
    %c0_38 = arith.constant 0 : index
    %c0_39 = arith.constant 0 : index
    %59 = vector.load %arg5[%c2, %c0_38, %c0_39] : memref<4x32x8xbf16, #tpu.memory_space<vmem>>, vector<1x32x8xbf16>
    %60 = vector.shape_cast %59 : vector<1x32x8xbf16> to vector<32x8xbf16>
    %cst_40 = arith.constant dense<0.000000e+00> : vector<16x8xf32>
    %61 = tpu.matmul %4, %60, %cst_40 {dimension_numbers = #tpu.dot_dimension_numbers<[1], [0], [0], [1], [0, 0, 1, 1], [], []>} : vector<16x32xbf16>, vector<32x8xbf16>, vector<16x8xf32> -> vector<16x8xf32>
    %c2_41 = arith.constant 2 : index
    %c0_42 = arith.constant 0 : index
    %c0_43 = arith.constant 0 : index
    %62 = vector.load %arg6[%c2_41, %c0_42, %c0_43] : memref<4x1x8xf32, #tpu.memory_space<vmem>>, vector<1x1x8xf32>
    %63 = vector.shape_cast %62 : vector<1x1x8xf32> to vector<1x8xf32>
    %64 = vector.broadcast %63 : vector<1x8xf32> to vector<16x8xf32>
    %65 = arith.addf %61, %64 : vector<16x8xf32>
    %66 = arith.truncf %65 : vector<16x8xf32> to vector<16x8xbf16>
    %c2_44 = arith.constant 2 : index
    %c0_45 = arith.constant 0 : index
    %c0_46 = arith.constant 0 : index
    %67 = vector.load %arg14[%c2_44, %c0_45, %c0_46] : memref<4x32x8xbf16, #tpu.memory_space<vmem>>, vector<1x32x8xbf16>
    %68 = vector.shape_cast %67 : vector<1x32x8xbf16> to vector<32x8xbf16>
    %c2_47 = arith.constant 2 : index
    %c0_48 = arith.constant 0 : index
    %c0_49 = arith.constant 0 : index
    %69 = vector.load %arg15[%c2_47, %c0_48, %c0_49] : memref<4x32x8xbf16, #tpu.memory_space<vmem>>, vector<1x32x8xbf16>
    %70 = vector.shape_cast %69 : vector<1x32x8xbf16> to vector<32x8xbf16>
    %cst_50 = arith.constant dense<0.000000e+00> : vector<16x32xf32>
    %71 = tpu.matmul %66, %68, %cst_50 {dimension_numbers = #tpu.dot_dimension_numbers<[1], [1], [0], [0], [0, 0, 1, 0], [], []>} : vector<16x8xbf16>, vector<32x8xbf16>, vector<16x32xf32> -> vector<16x32xf32>
    %cst_51 = arith.constant dense<0xFF800000> : vector<16xf32>
    %72 = vector.multi_reduction <maximumf>, %71, %cst_51 [1] : vector<16x32xf32> to vector<16xf32>
    %73 = vector.shape_cast %72 : vector<16xf32> to vector<16x1xf32>
    %74 = vector.broadcast %73 : vector<16x1xf32> to vector<16x32xf32>
    %75 = arith.subf %71, %74 : vector<16x32xf32>
    %76 = math.exp %75 : vector<16x32xf32>
    %cst_52 = arith.constant dense<0.000000e+00> : vector<16xf32>
    %77 = vector.multi_reduction <add>, %76, %cst_52 [1] : vector<16x32xf32> to vector<16xf32>
    %78 = vector.shape_cast %77 : vector<16xf32> to vector<16x1xf32>
    %79 = tpu.reciprocal %78 {approx = true} : vector<16x1xf32> -> vector<16x1xf32>
    %80 = vector.broadcast %79 : vector<16x1xf32> to vector<16x32xf32>
    %81 = arith.mulf %76, %80 : vector<16x32xf32>
    %82 = arith.truncf %81 : vector<16x32xf32> to vector<16x32xbf16>
    %cst_53 = arith.constant dense<0.000000e+00> : vector<16x8xf32>
    %83 = tpu.matmul %82, %70, %cst_53 {dimension_numbers = #tpu.dot_dimension_numbers<[1], [0], [0], [1], [0, 0, 1, 1], [], []>} : vector<16x32xbf16>, vector<32x8xbf16>, vector<16x8xf32> -> vector<16x8xf32>
    %84 = arith.truncf %83 : vector<16x8xf32> to vector<16x8xbf16>
    %c0_54 = arith.constant 0 : index
    %c16 = arith.constant 16 : index
    %85 = vector.load %arg16[%c0_54, %c16] : memref<16x32xbf16, #tpu.memory_space<vmem>>, vector<16x8xbf16>
    tpu.vector_store %arg16[%c0_54, %c16], %84 {strides = array<i32>} : memref<16x32xbf16, #tpu.memory_space<vmem>>, vector<16x8xbf16>,
    %c3 = arith.constant 3 : index
    %c0_55 = arith.constant 0 : index
    %c0_56 = arith.constant 0 : index
    %86 = vector.load %arg5[%c3, %c0_55, %c0_56] : memref<4x32x8xbf16, #tpu.memory_space<vmem>>, vector<1x32x8xbf16>
    %87 = vector.shape_cast %86 : vector<1x32x8xbf16> to vector<32x8xbf16>
    %cst_57 = arith.constant dense<0.000000e+00> : vector<16x8xf32>
    %88 = tpu.matmul %4, %87, %cst_57 {dimension_numbers = #tpu.dot_dimension_numbers<[1], [0], [0], [1], [0, 0, 1, 1], [], []>} : vector<16x32xbf16>, vector<32x8xbf16>, vector<16x8xf32> -> vector<16x8xf32>
    %c3_58 = arith.constant 3 : index
    %c0_59 = arith.constant 0 : index
    %c0_60 = arith.constant 0 : index
    %89 = vector.load %arg6[%c3_58, %c0_59, %c0_60] : memref<4x1x8xf32, #tpu.memory_space<vmem>>, vector<1x1x8xf32>
    %90 = vector.shape_cast %89 : vector<1x1x8xf32> to vector<1x8xf32>
    %91 = vector.broadcast %90 : vector<1x8xf32> to vector<16x8xf32>
    %92 = arith.addf %88, %91 : vector<16x8xf32>
    %93 = arith.truncf %92 : vector<16x8xf32> to vector<16x8xbf16>
    %c3_61 = arith.constant 3 : index
    %c0_62 = arith.constant 0 : index
    %c0_63 = arith.constant 0 : index
    %94 = vector.load %arg14[%c3_61, %c0_62, %c0_63] : memref<4x32x8xbf16, #tpu.memory_space<vmem>>, vector<1x32x8xbf16>
    %95 = vector.shape_cast %94 : vector<1x32x8xbf16> to vector<32x8xbf16>
    %c3_64 = arith.constant 3 : index
    %c0_65 = arith.constant 0 : index
    %c0_66 = arith.constant 0 : index
    %96 = vector.load %arg15[%c3_64, %c0_65, %c0_66] : memref<4x32x8xbf16, #tpu.memory_space<vmem>>, vector<1x32x8xbf16>
    %97 = vector.shape_cast %96 : vector<1x32x8xbf16> to vector<32x8xbf16>
    %cst_67 = arith.constant dense<0.000000e+00> : vector<16x32xf32>
    %98 = tpu.matmul %93, %95, %cst_67 {dimension_numbers = #tpu.dot_dimension_numbers<[1], [1], [0], [0], [0, 0, 1, 0], [], []>} : vector<16x8xbf16>, vector<32x8xbf16>, vector<16x32xf32> -> vector<16x32xf32>
    %cst_68 = arith.constant dense<0xFF800000> : vector<16xf32>
    %99 = vector.multi_reduction <maximumf>, %98, %cst_68 [1] : vector<16x32xf32> to vector<16xf32>
    %100 = vector.shape_cast %99 : vector<16xf32> to vector<16x1xf32>
    %101 = vector.broadcast %100 : vector<16x1xf32> to vector<16x32xf32>
    %102 = arith.subf %98, %101 : vector<16x32xf32>
    %103 = math.exp %102 : vector<16x32xf32>
    %cst_69 = arith.constant dense<0.000000e+00> : vector<16xf32>
    %104 = vector.multi_reduction <add>, %103, %cst_69 [1] : vector<16x32xf32> to vector<16xf32>
    %105 = vector.shape_cast %104 : vector<16xf32> to vector<16x1xf32>
    %106 = tpu.reciprocal %105 {approx = true} : vector<16x1xf32> -> vector<16x1xf32>
    %107 = vector.broadcast %106 : vector<16x1xf32> to vector<16x32xf32>
    %108 = arith.mulf %103, %107 : vector<16x32xf32>
    %109 = arith.truncf %108 : vector<16x32xf32> to vector<16x32xbf16>
    %cst_70 = arith.constant dense<0.000000e+00> : vector<16x8xf32>
    %110 = tpu.matmul %109, %97, %cst_70 {dimension_numbers = #tpu.dot_dimension_numbers<[1], [0], [0], [1], [0, 0, 1, 1], [], []>} : vector<16x32xbf16>, vector<32x8xbf16>, vector<16x8xf32> -> vector<16x8xf32>
    %111 = arith.truncf %110 : vector<16x8xf32> to vector<16x8xbf16>
    %c0_71 = arith.constant 0 : index
    %c24 = arith.constant 24 : index
    %112 = vector.load %arg16[%c0_71, %c24] : memref<16x32xbf16, #tpu.memory_space<vmem>>, vector<16x8xbf16>
    tpu.vector_store %arg16[%c0_71, %c24], %111 {strides = array<i32>} : memref<16x32xbf16, #tpu.memory_space<vmem>>, vector<16x8xbf16>,
    %c0_72 = arith.constant 0 : index
    %c0_73 = arith.constant 0 : index
    %113 = vector.load %arg16[%c0_72, %c0_73] : memref<16x32xbf16, #tpu.memory_space<vmem>>, vector<16x32xbf16>
    %c0_74 = arith.constant 0 : index
    %c0_75 = arith.constant 0 : index
    %114 = vector.load %arg11[%c0_74, %c0_75] : memref<32x32xbf16, #tpu.memory_space<vmem>>, vector<32x32xbf16>
    %cst_76 = arith.constant dense<0.000000e+00> : vector<16x32xf32>
    %115 = tpu.matmul %113, %114, %cst_76 {dimension_numbers = #tpu.dot_dimension_numbers<[1], [0], [0], [1], [0, 0, 1, 1], [], []>} : vector<16x32xbf16>, vector<32x32xbf16>, vector<16x32xf32> -> vector<16x32xf32>
    %c0_77 = arith.constant 0 : index
    %c0_78 = arith.constant 0 : index
    %116 = vector.load %arg12[%c0_77, %c0_78] : memref<1x32xf32, #tpu.memory_space<vmem>>, vector<1x32xf32>
    %117 = vector.broadcast %116 : vector<1x32xf32> to vector<16x32xf32>
    %118 = arith.addf %115, %117 : vector<16x32xf32>
    %c0_79 = arith.constant 0 : index
    %c0_80 = arith.constant 0 : index
    %c0_81 = arith.constant 0 : index
    %119 = vector.load %arg13[%c0_79, %c0_80, %c0_81] : memref<1x16x32xf32, #tpu.memory_space<vmem>>, vector<1x16x32xf32>
    %120 = vector.shape_cast %119 : vector<1x16x32xf32> to vector<16x32xf32>
    %121 = vector.shape_cast %118 : vector<16x32xf32> to vector<1x16x32xf32>
    tpu.vector_store %arg13[%c0_79, %c0_80, %c0_81], %121 {strides = array<i32>} : memref<1x16x32xf32, #tpu.memory_space<vmem>>, vector<1x16x32xf32>,
    return
  }
  func.func @transform_0(%arg0: i32, %arg1: i32) -> (i32, i32, i32) {
    %c0_i32 = arith.constant 0 : i32
    %c0_i32_0 = arith.constant 0 : i32
    return %arg0, %arg1, %c0_i32 : i32, i32, i32
  }
  func.func @transform_1(%arg0: i32, %arg1: i32) -> (i32, i32, i32) {
    %c0_i32 = arith.constant 0 : i32
    %c0_i32_0 = arith.constant 0 : i32
    %c0_i32_1 = arith.constant 0 : i32
    return %arg0, %c0_i32, %c0_i32_0 : i32, i32, i32
  }
  func.func @transform_2(%arg0: i32, %arg1: i32) -> (i32, i32, i32) {
    %c0_i32 = arith.constant 0 : i32
    %c0_i32_0 = arith.constant 0 : i32
    %c0_i32_1 = arith.constant 0 : i32
    return %arg0, %c0_i32, %c0_i32_0 : i32, i32, i32
  }
  func.func @transform_3(%arg0: i32, %arg1: i32) -> (i32, i32, i32) {
    %c0_i32 = arith.constant 0 : i32
    %c0_i32_0 = arith.constant 0 : i32
    %c0_i32_1 = arith.constant 0 : i32
    %c0_i32_2 = arith.constant 0 : i32
    return %c0_i32, %c0_i32_0, %c0_i32_1 : i32, i32, i32
  }
  func.func @transform_4(%arg0: i32, %arg1: i32) -> (i32, i32, i32) {
    %c0_i32 = arith.constant 0 : i32
    %c0_i32_0 = arith.constant 0 : i32
    %c0_i32_1 = arith.constant 0 : i32
    %c0_i32_2 = arith.constant 0 : i32
    return %c0_i32, %c0_i32_0, %c0_i32_1 : i32, i32, i32
  }
  func.func @transform_5(%arg0: i32, %arg1: i32) -> (i32, i32, i32) {
    %c0_i32 = arith.constant 0 : i32
    %c0_i32_0 = arith.constant 0 : i32
    %c0_i32_1 = arith.constant 0 : i32
    %c0_i32_2 = arith.constant 0 : i32
    return %c0_i32, %c0_i32_0, %c0_i32_1 : i32, i32, i32
  }
  func.func @transform_6(%arg0: i32, %arg1: i32) -> (i32, i32, i32) {
    %c0_i32 = arith.constant 0 : i32
    %c0_i32_0 = arith.constant 0 : i32
    %c0_i32_1 = arith.constant 0 : i32
    %c0_i32_2 = arith.constant 0 : i32
    return %c0_i32, %c0_i32_0, %c0_i32_1 : i32, i32, i32
  }
  func.func @transform_7(%arg0: i32, %arg1: i32) -> (i32, i32, i32) {
    %c0_i32 = arith.constant 0 : i32
    %c0_i32_0 = arith.constant 0 : i32
    %c0_i32_1 = arith.constant 0 : i32
    %c0_i32_2 = arith.constant 0 : i32
    return %c0_i32, %c0_i32_0, %c0_i32_1 : i32, i32, i32
  }
  func.func @transform_8(%arg0: i32, %arg1: i32) -> (i32, i32, i32) {
    %c0_i32 = arith.constant 0 : i32
    %c0_i32_0 = arith.constant 0 : i32
    %c0_i32_1 = arith.constant 0 : i32
    %c0_i32_2 = arith.constant 0 : i32
    return %c0_i32, %c0_i32_0, %c0_i32_1 : i32, i32, i32
  }
  func.func @transform_9(%arg0: i32, %arg1: i32) -> (i32, i32) {
    %c0_i32 = arith.constant 0 : i32
    %c0_i32_0 = arith.constant 0 : i32
    %c0_i32_1 = arith.constant 0 : i32
    return %c0_i32, %c0_i32_0 : i32, i32
  }
  func.func @transform_10(%arg0: i32, %arg1: i32) -> (i32, i32) {
    %c0_i32 = arith.constant 0 : i32
    %c0_i32_0 = arith.constant 0 : i32
    %c0_i32_1 = arith.constant 0 : i32
    return %c0_i32, %c0_i32_0 : i32, i32
  }
  func.func @transform_11(%arg0: i32, %arg1: i32) -> (i32, i32, i32) {
    %c0_i32 = arith.constant 0 : i32
    %c0_i32_0 = arith.constant 0 : i32
    return %arg0, %arg1, %c0_i32 : i32, i32, i32
  }
}

</mosaic_0001>

<bundles_post_ra>
// kernel: tpu_custom_call.1
= control target key start
LH: loop header
LB: loop body
LE: loop exit
PB: predicated region body
PF: predicated region fallthrough
CT: control target
= control target key end

     0   :  { %s3611_s0 = inlined_call_operand.vmem [shape: bf16[2,32,32], index: 0, kind: input, shape index: {}]   ;;  %s3612_s1 = inlined_call_operand.vmem [shape: bf16[2,32,32], index: 1, kind: input, shape index: {}]   ;;  %s3613_s2 = inlined_call_operand.vmem [shape: bf16[2,32,32], index: 2, kind: input, shape index: {}]   ;;  %s3614_s3 = inlined_call_operand.vmem [shape: bf16[4,32,8], index: 3, kind: input, shape index: {}]   ;;  %s3615_s4 = inlined_call_operand.vmem [shape: f32[4,1,8], index: 4, kind: input, shape index: {}]   ;;  %s3616_s5 = inlined_call_operand.vmem [shape: bf16[4,32,8], index: 5, kind: input, shape index: {}]   ;;  %s3617_s6 = inlined_call_operand.vmem [shape: f32[4,1,8], index: 6, kind: input, shape index: {}]   ;;  %s3618_s7 = inlined_call_operand.vmem [shape: bf16[4,32,8], index: 7, kind: input, shape index: {}]   ;;  %s3619_s8 = inlined_call_operand.vmem [shape: f32[4,1,8], index: 8, kind: input, shape index: {}]   ;;  %s3620_s9 = inlined_call_operand.vmem [shape: bf16[32,32], index: 9, kind: input, shape index: {}]   ;;  %s3621_s10 = inlined_call_operand.vmem [shape: f32[1,32], index: 10, kind: input, shape index: {}]   ;;  %s3622_s11 = inlined_call_operand.hbm [shape: f32[2,32,32], index: 11, kind: output, shape index: {}]  }
   0x1   :  { %3636 = sst [smem:[#allocation18_spill]] %s3621_s10 }
   0x2   :  { %3637 = sst [smem:[#allocation19_spill]] %s3622_s11 }
   0x3   :  { %16 = vsyncpa [#allocation6], 0 }
   0x4   :  { %18 = vsyncpa [#allocation6 + $0x1], 0  ;;  %s3177_s17 = smov 0   ;;  %s3179_s18 = smov 0  }
   0x5   :  { %s3181_s19 = smov 0   ;;  %s3183_s20 = smov 0  }
   0x6   :  { %s3185_s21 = smov 0   ;;  %s3187_s22 = smov 0  }
   0x7   :  { %s3189_s23 = smov 0   ;;  %s3191_s24 = smov 0  }
   0x8 LB: > { %3638 = sst [smem:[#allocation8_spill]] %s3080_s17  ;;  %s2383_s25 = sadd.s32 4294967295, %s3108_s24   ;;  %s3108_s24 = sphi %s3191_s24, %s24_s24   ;;  %s3104_s23 = sphi %s3189_s23, %s3663_s23   ;;  %s3100_s22 = sphi %s3187_s22, %s3666_s22   ;;  %s3096_s21 = sphi %s3185_s21, %s3661_s21   ;;  %s3092_s20 = sphi %s3183_s20, %s3660_s20   ;;  %s3088_s19 = sphi %s3181_s19, %s3659_s19   ;;  %s3084_s18 = sphi %s3179_s18, %s3665_s18   ;;  %s3080_s17 = sphi %s3177_s17, %s3664_s17  }
   0x9   : > { %3639 = sst [smem:[#allocation9_spill]] %s3088_s19  ;;  %s2384_s26 = sadd.s32 4294967294, %s3108_s24  }
   0xa   : > { %3640 = sst [smem:[#allocation10_spill]] %s3100_s22  ;;  %s33_s27 = sadd.s32 1, %s3100_s22 }
   0xb   : > { %3641 = sst [smem:[#allocation11_spill]] %s3104_s23  ;;  %p34_p0 = scmp.ge.s32.totalorder %s33_s27, 2 }
   0xc   : > { %3642 = sst [smem:[#allocation12_spill]] %s3108_s24  ;;  %s36_s28 = sadd.s32 1, %s3104_s23 }
   0xd   : > { %p303_p1 = scmp.ne.s32.totalorder %s3088_s19, %s3084_s18  ;;  %p304_p2 = scmp.eq.s32.totalorder %s2383_s25, 3 }
   0xe   : > { %s3668_s27 = smov (%p34_p0, %s33_s27), 0  ;;  %s3670_s28 = smov (!%p34_p0, %s36_s28), %s3104_s23 }
   0xf   : > { %3643 = sst [smem:[#allocation13_spill]] %s3668_s27  ;;  %s289_s29 = ssub.s32 %s3100_s22, %s3668_s27 }
  0x10   : > { %p3228_p3 = por %p304_p2, %p303_p1  ;;  %p38_p4 = scmp.ge.s32.totalorder %s3670_s28, 2 }
  0x11   : > { %p309_p5 = scmp.ne.s32.totalorder %s3084_s18, %s3080_s17  ;;  %p310_p6 = scmp.eq.s32.totalorder %s2384_s26, 3 }
  0x12   : > { %s3644_s30 = scalar_select %p3228_p3, 1, 0 }
  0x13   : > { %p2387_p7 = scmp.ge.s32.totalorder %s3108_s24, 1  ;;  %s3672_s28 = smov (%p38_p4, %s3670_s28), 0 }
  0x14   : > { %3645 = sst [smem:[#allocation14_spill]] %s3644_s30  ;;  %p3237_p8 = por %p310_p6, %p309_p5 }
  0x15   : > { %3646 = sst [smem:[#allocation15_spill]] %s3672_s28  ;;  %p381_p9 = scmp.lt.s32.totalorder %s3108_s24, 5 }
  0x16   : > { %s3647_s12 = scalar_select %p3237_p8, 1, 0 }
  0x17   : > { %s288_s13 = ssub.s32 %s3104_s23, %s3672_s28  ;;  %s293_s14 = sadd.s32 1, %s3088_s19 }
  0x18   : > { %3648 = sst [smem:[#allocation16_spill]] %s3647_s12  ;;  %s290_s15 = sor.u32 %s289_s29, %s288_s13 }
  0x19   : > { %p382_p10 = pnand %p2387_p7, %p381_p9  ;;  %p291_p11 = scmp.eq.s32.totalorder %s290_s15, 0 }
  0x1a   : > { %s3635_s25 = sand.u32 (!%p382_p10), 1, %s3084_s18   ;;  %s3250_s26 = sshll.u32 (!%p382_p10), %s3092_s20, 1 }
  0x1b   : > { %s3246_s16 = scalar_select %p291_p11, %s3088_s19, %s293_s14  }
  0x1c   : > { %385 = sbr.rel (%p382_p10) target bundleno = 3697 (0xe71), region = 64  ;;  %s2388_s27 = sshll.u32 (!%p382_p10), %s3635_s25, 4 }
  0x1d   : > { %3649 = sst [smem:[#allocation17_spill]] %s3246_s16  ;;  %p436_p12 = scmp.lt.s32.totalorder (!%p382_p10), %s3096_s21, 1 }
  0x1e   : > { %p438_p13 = scmp.lt.s32.totalorder (!%p382_p10), %s3250_s26, 3  ;;  %s3269_s10 = scalar_lea.vmem (!%p382_p10), [#allocation5], %s2388_s27 }
  0x1f   : > { %p2396_p0 = scmp.ne.s32.totalorder (!%p382_p10), %s3092_s20, 0 }
  0x21   : > { %s437_s29 = scalar_select %p436_p12, %s3096_s21, 1 }
  0x22   : > { %s439_s13 = scalar_select %p438_p13, %s3250_s26, 3 }
  0x23   : > { %s2390_s15 = sshll.u32 %s437_s29, 2  ;;  %s2578_s14 = sshll.u32 %s437_s29, 4 }
  0x24   : > { %s441_s28 = sadd.s32 %s2390_s15, %s439_s13  ;;  %s449_s16 = scalar_lea.vmem %s3612_s1, %s2578_s14 }
  0x25   : > { %s2391_s19 = sshll.u32 %s441_s28, 2  ;;  %s454_s24 = scalar_lea.vmem %s3613_s2, %s2578_s14 }
  0x26   : > { %s3267_s25 = scalar_lea.vmem %s3611_s0, %s2391_s19  ;;  %460 = sbr.rel (%p2396_p0) target bundleno = 281 (0x119), region = 68 }
  0x2b   : > { %v2936_v0 = vld [vmem:[%s3616_s5 + $0x8] sm:$0xff]   ;;  %v2938_v2 = vld [vmem:[%s3616_s5] sm:$0xff]   ;;  %vm502_vm0 = vcmask 261120   ;;  %v2944_v8 = vld [vmem:[%s3616_s5 + $0x18] sm:$0xff]   ;;  %vm662_vm1 = vcmask 60416  }
  0x2c   : > { %v2937_v1 = vld [vmem:[%s3618_s7 + $0x8] sm:$0xff]   ;;  %2691 = vmatprep.subr.bf16.mxu0 %v2936_v0  ;;  %v2939_v3 = vld [vmem:[%s3618_s7] sm:$0xff]   ;;  %v2945_v9 = vld [vmem:[%s3618_s7 + $0x18] sm:$0xff]  }
  0x2d   : > { %2699 = vmatprep.subr.bf16.mxu1 %v2937_v1  ;;  %2692 = vmatpush3.bf16.msra.mxu0 %v2936_v0  ;;  %v2940_v4 = vld [vmem:[%s449_s16] sm:$0xff]   ;;  %v2942_v6 = vld [vmem:[%s449_s16 + $0x8] sm:$0xff]   ;;  %v2946_v10 = vld [vmem:[%s3616_s5 + $0x10] sm:$0xff]  }
  0x2e   : > { %2700 = vmatpush3.bf16.msra.mxu1 %v2937_v1  ;;  %2693 = vmatprep.subr.bf16.mxu0 %v2938_v2  ;;  %v2941_v5 = vld [vmem:[%s454_s24] sm:$0xff]   ;;  %v2943_v7 = vld [vmem:[%s454_s24 + $0x8] sm:$0xff]   ;;  %v2947_v11 = vld [vmem:[%s3618_s7 + $0x10] sm:$0xff]  }
  0x2f   : > { %2701 = vmatprep.subr.bf16.mxu1 %v2939_v3  ;;  %2695 = vmatprep.mubr.msk.bf16.mxu0 %vm502_vm0, %v2940_v4  ;;  %v2948_v12 = vld [vmem:[%s3616_s5 + $0x28] sm:$0xff]   ;;  %v2950_v14 = vld [vmem:[%s3616_s5 + $0x20] sm:$0xff]   ;;  %v2952_v16 = vld [vmem:[%s3616_s5 + $0x38] sm:$0xff]  }
  0x30   : > { %2703 = vmatprep.mubr.msk.bf16.mxu1 %vm502_vm0, %v2941_v5  ;;  %v2949_v13 = vld [vmem:[%s3618_s7 + $0x28] sm:$0xff]   ;;  %v2951_v15 = vld [vmem:[%s3618_s7 + $0x20] sm:$0xff]   ;;  %v2953_v17 = vld [vmem:[%s3618_s7 + $0x38] sm:$0xff]  }
  0x31   : > { %2694 = vmatpush3.bf16.msra.mxu0 %v2938_v2  ;;  %v2954_v18 = vld [vmem:[%s3616_s5 + $0x30] sm:$0xff]   ;;  %v2397_v20 = vld [vmem:[%s3617_s6] ss:$0 sm:$0xff]  ;;  %v2424_v42 = vld [vmem:[%s3617_s6 + $0x1] ss:$0 sm:$0xff] }
  0x32   : > { %2702 = vmatpush3.bf16.msra.mxu1 %v2939_v3  ;;  %2707 = vmatprep.subr.bf16.mxu0 %v2944_v8  ;;  %v2955_v19 = vld [vmem:[%s3618_s7 + $0x30] sm:$0xff]   ;;  %v2404_v21 = vld [vmem:[%s3619_s8] ss:$0 sm:$0xff]  ;;  %v2434_v43 = vld [vmem:[%s3619_s8 + $0x1] ss:$0 sm:$0xff] }
  0x33   : > { %2715 = vmatprep.subr.bf16.mxu1 %v2945_v9  ;;  %v2452_v2 = vld [vmem:[%s3617_s6 + $0x2] ss:$0 sm:$0xff] }
  0x34   : > { %2696 = vmatmul.mubr.msk.bf16.vlgmr.msra.gmra.mxu0 %vm502_vm0, %v2942_v6  ;;  %v2462_v3 = vld [vmem:[%s3619_s8 + $0x2] ss:$0 sm:$0xff] }
  0x35   : > { %2704 = vmatmul.mubr.msk.bf16.vlgmr.msra.gmra.mxu1 %vm502_vm0, %v2943_v7  ;;  %2708 = vmatpush3.bf16.msra.mxu0 %v2944_v8 }
  0x36   : > { %2716 = vmatpush3.bf16.msra.mxu1 %v2945_v9  ;;  %2709 = vmatprep.subr.bf16.mxu0 %v2946_v10 }
  0x37   : > { %2717 = vmatprep.subr.bf16.mxu1 %v2947_v11  ;;  %2711 = vmatprep.mubr.msk.bf16.mxu0 %vm502_vm0, %v2940_v4 }
  0x38   : > { %2719 = vmatprep.mubr.msk.bf16.mxu1 %vm502_vm0, %v2941_v5 }
  0x39   : > { %2710 = vmatpush3.bf16.msra.mxu0 %v2946_v10 }
  0x3a   : > { %2718 = vmatpush3.bf16.msra.mxu1 %v2947_v11  ;;  %2723 = vmatprep.subr.bf16.mxu0 %v2948_v12 }
  0x3b   : > { %2731 = vmatprep.subr.bf16.mxu1 %v2949_v13 }
  0x3c   : > { %2712 = vmatmul.mubr.msk.bf16.vlgmr.msra.gmra.mxu0 %vm502_vm0, %v2942_v6 }
  0x3d   : > { %2720 = vmatmul.mubr.msk.bf16.vlgmr.msra.gmra.mxu1 %vm502_vm0, %v2943_v7  ;;  %2724 = vmatpush3.bf16.msra.mxu0 %v2948_v12 }
  0x3e   : > { %2732 = vmatpush3.bf16.msra.mxu1 %v2949_v13  ;;  %2725 = vmatprep.subr.bf16.mxu0 %v2950_v14 }
  0x3f   : > { %2733 = vmatprep.subr.bf16.mxu1 %v2951_v15  ;;  %2727 = vmatprep.mubr.msk.bf16.mxu0 %vm502_vm0, %v2940_v4 }
  0x40   : > { %2735 = vmatprep.mubr.msk.bf16.mxu1 %vm502_vm0, %v2941_v5 }
  0x41   : > { %2726 = vmatpush3.bf16.msra.mxu0 %v2950_v14 }
  0x42   : > { %2734 = vmatpush3.bf16.msra.mxu1 %v2951_v15  ;;  %2739 = vmatprep.subr.bf16.mxu0 %v2952_v16 }
  0x43   : > { %2747 = vmatprep.subr.bf16.mxu1 %v2953_v17 }
  0x44   : > { %2728 = vmatmul.mubr.msk.bf16.vlgmr.msra.gmra.mxu0 %vm502_vm0, %v2942_v6 }
  0x45   : > { %2736 = vmatmul.mubr.msk.bf16.vlgmr.msra.gmra.mxu1 %vm502_vm0, %v2943_v7  ;;  %2740 = vmatpush3.bf16.msra.mxu0 %v2952_v16 }
  0x46   : > { %2748 = vmatpush3.bf16.msra.mxu1 %v2953_v17  ;;  %2741 = vmatprep.subr.bf16.mxu0 %v2954_v18 }
  0x47   : > { %2749 = vmatprep.subr.bf16.mxu1 %v2955_v19  ;;  %2743 = vmatprep.mubr.msk.bf16.mxu0 %vm502_vm0, %v2940_v4 }
  0x48   : > { %2751 = vmatprep.mubr.msk.bf16.mxu1 %vm502_vm0, %v2941_v5 }
  0x49   : > { %2742 = vmatpush3.bf16.msra.mxu0 %v2954_v18 }
  0x4a   : > { %2750 = vmatpush3.bf16.msra.mxu1 %v2955_v19 }
  0x4c   : > { %2744 = vmatmul.mubr.msk.bf16.vlgmr.msra.gmra.mxu0 %vm502_vm0, %v2942_v6 }
  0x4d   : > { %2752 = vmatmul.mubr.msk.bf16.vlgmr.msra.gmra.mxu1 %vm502_vm0, %v2943_v7 }
  0xf4   : > { %v2697_v22 = vpop.f32.mrf.mxu0 }
  0xf5   : > { %v552_v23 = vadd.f32 %v2697_v22, %v2397_v20  ;;  %v2705_v24 = vpop.f32.mrf.mxu1 }
  0xf6   : > { %v640_v25 = vadd.f32 %v2705_v24, %v2404_v21  ;;  %v543_v26 = vpop.f32.mrf.mxu0 }
  0xf7   : > { %v2582_v27 = vpack.c.bf16 %v552_v23, %v552_v23  ;;  %v544_v28 = vadd.f32 %v2397_v20, %v543_v26  ;;  %v631_v29 = vpop.f32.mrf.mxu1 }
  0xf8   : > { %v2586_v30 = vpack.c.bf16 %v640_v25, %v640_v25  ;;  %v632_v31 = vadd.f32 %v2404_v21, %v631_v29  ;;  %v2698_v32 = vpop.f32.mrf.mxu0  ;;  %v2490_v29 = vld [vmem:[%s3619_s8 + $0x3] ss:$0 sm:$0xff] }
  0xf9   : > { %665 = vst.msk [vmem:[#allocation2 + $0x8] sm:$0xf] %vm662_vm1, %v2582_v27  ;;  %v2580_v33 = vpack.c.bf16 %v544_v28, %v544_v28  ;;  %v555_v34 = vadd.f32 %v2698_v32, %v2397_v20  ;;  %v2706_v35 = vpop.f32.mrf.mxu1  ;;  %v2480_v28 = vld [vmem:[%s3617_s6 + $0x3] ss:$0 sm:$0xff] }
  0xfa   : > { %685 = vst.msk [vmem:[#allocation3 + $0x8] sm:$0xf] %vm662_vm1, %v2586_v30  ;;  %v2584_v36 = vpack.c.bf16 %v632_v31, %v632_v31  ;;  %v643_v37 = vadd.f32 %v2706_v35, %v2404_v21  ;;  %v546_v38 = vpop.f32.mrf.mxu0 }
  0xfb   : > { %663 = vst.msk [vmem:[#allocation2] sm:$0xf] %vm662_vm1, %v2580_v33  ;;  %v2583_v39 = vpack.c.bf16 %v555_v34, %v555_v34  ;;  %v547_v40 = vadd.f32 %v2397_v20, %v546_v38  ;;  %v634_v41 = vpop.f32.mrf.mxu1 }
  0xfc   : > { %683 = vst.msk [vmem:[#allocation3] sm:$0xf] %vm662_vm1, %v2584_v36  ;;  %v2587_v44 = vpack.c.bf16 %v643_v37, %v643_v37  ;;  %v635_v45 = vadd.f32 %v2404_v21, %v634_v41  ;;  %v2713_v47 = vpop.f32.mrf.mxu0 }
  0xfd   : > { %666 = vst.msk [vmem:[#allocation2 + $0xc] sm:$0xf] %vm662_vm1, %v2583_v39  ;;  %v2581_v46 = vpack.c.bf16 %v547_v40, %v547_v40  ;;  %v2721_v48 = vpop.f32.mrf.mxu1  ;;  %v755_v50 = vadd.f32 %v2713_v47, %v2424_v42 }
  0xfe   : > { %686 = vst.msk [vmem:[#allocation3 + $0xc] sm:$0xf] %vm662_vm1, %v2587_v44  ;;  %v2585_v49 = vpack.c.bf16 %v635_v45, %v635_v45  ;;  %v829_v51 = vadd.f32 %v2721_v48, %v2434_v43  ;;  %v746_v52 = vpop.f32.mrf.mxu0 }
  0xff   : > { %664 = vst.msk [vmem:[#allocation2 + $0x4] sm:$0xf] %vm662_vm1, %v2581_v46  ;;  %v820_v53 = vpop.f32.mrf.mxu1  ;;  %v2590_v54 = vpack.c.bf16 %v755_v50, %v755_v50  ;;  %v747_v56 = vadd.f32 %v2424_v42, %v746_v52 }
 0x100   : > { %684 = vst.msk [vmem:[#allocation3 + $0x4] sm:$0xf] %vm662_vm1, %v2585_v49  ;;  %v2594_v55 = vpack.c.bf16 %v829_v51, %v829_v51  ;;  %v821_v57 = vadd.f32 %v2434_v43, %v820_v53  ;;  %v2714_v58 = vpop.f32.mrf.mxu0 }
 0x101   : > { %v2722_v59 = vpop.f32.mrf.mxu1  ;;  %854 = vst.msk [vmem:[#allocation2 + $0x18] sm:$0xf] %vm662_vm1, %v2590_v54  ;;  %v2588_v60 = vpack.c.bf16 %v747_v56, %v747_v56  ;;  %v758_v62 = vadd.f32 %v2714_v58, %v2424_v42 }
 0x102   : > { %875 = vst.msk [vmem:[#allocation3 + $0x18] sm:$0xf] %vm662_vm1, %v2594_v55  ;;  %v2592_v61 = vpack.c.bf16 %v821_v57, %v821_v57  ;;  %v832_v63 = vadd.f32 %v2722_v59, %v2434_v43  ;;  %v749_v0 = vpop.f32.mrf.mxu0 }
 0x103   : > { %v823_v1 = vpop.f32.mrf.mxu1  ;;  %852 = vst.msk [vmem:[#allocation2 + $0x10] sm:$0xf] %vm662_vm1, %v2588_v60  ;;  %v2591_v4 = vpack.c.bf16 %v758_v62, %v758_v62  ;;  %v750_v6 = vadd.f32 %v2424_v42, %v749_v0 }
 0x104   : > { %873 = vst.msk [vmem:[#allocation3 + $0x10] sm:$0xf] %vm662_vm1, %v2592_v61  ;;  %v2595_v5 = vpack.c.bf16 %v832_v63, %v832_v63  ;;  %v824_v7 = vadd.f32 %v2434_v43, %v823_v1  ;;  %v2729_v8 = vpop.f32.mrf.mxu0 }
 0x105   : > { %v2737_v9 = vpop.f32.mrf.mxu1  ;;  %855 = vst.msk [vmem:[#allocation2 + $0x1c] sm:$0xf] %vm662_vm1, %v2591_v4  ;;  %v2589_v10 = vpack.c.bf16 %v750_v6, %v750_v6  ;;  %v945_v12 = vadd.f32 %v2729_v8, %v2452_v2 }
 0x106   : > { %876 = vst.msk [vmem:[#allocation3 + $0x1c] sm:$0xf] %vm662_vm1, %v2595_v5  ;;  %v2593_v11 = vpack.c.bf16 %v824_v7, %v824_v7  ;;  %v1019_v13 = vadd.f32 %v2737_v9, %v2462_v3  ;;  %v936_v14 = vpop.f32.mrf.mxu0 }
 0x107   : > { %v1010_v15 = vpop.f32.mrf.mxu1  ;;  %853 = vst.msk [vmem:[#allocation2 + $0x14] sm:$0xf] %vm662_vm1, %v2589_v10  ;;  %v2598_v16 = vpack.c.bf16 %v945_v12, %v945_v12  ;;  %v937_v18 = vadd.f32 %v2452_v2, %v936_v14 }
 0x108   : > { %874 = vst.msk [vmem:[#allocation3 + $0x14] sm:$0xf] %vm662_vm1, %v2593_v11  ;;  %v2602_v17 = vpack.c.bf16 %v1019_v13, %v1019_v13  ;;  %v1011_v19 = vadd.f32 %v2462_v3, %v1010_v15  ;;  %v2730_v20 = vpop.f32.mrf.mxu0 }
 0x109   : > { %v2738_v21 = vpop.f32.mrf.mxu1  ;;  %1044 = vst.msk [vmem:[#allocation2 + $0x28] sm:$0xf] %vm662_vm1, %v2598_v16  ;;  %v2596_v22 = vpack.c.bf16 %v937_v18, %v937_v18  ;;  %v948_v24 = vadd.f32 %v2730_v20, %v2452_v2 }
 0x10a   : > { %1065 = vst.msk [vmem:[#allocation3 + $0x28] sm:$0xf] %vm662_vm1, %v2602_v17  ;;  %v2600_v23 = vpack.c.bf16 %v1011_v19, %v1011_v19  ;;  %v1022_v25 = vadd.f32 %v2738_v21, %v2462_v3  ;;  %v939_v26 = vpop.f32.mrf.mxu0 }
 0x10b   : > { %v1013_v27 = vpop.f32.mrf.mxu1  ;;  %1042 = vst.msk [vmem:[#allocation2 + $0x20] sm:$0xf] %vm662_vm1, %v2596_v22  ;;  %v2599_v30 = vpack.c.bf16 %v948_v24, %v948_v24  ;;  %v940_v32 = vadd.f32 %v2452_v2, %v939_v26 }
 0x10c   : > { %1063 = vst.msk [vmem:[#allocation3 + $0x20] sm:$0xf] %vm662_vm1, %v2600_v23  ;;  %v2603_v31 = vpack.c.bf16 %v1022_v25, %v1022_v25  ;;  %v1014_v33 = vadd.f32 %v2462_v3, %v1013_v27  ;;  %v2745_v34 = vpop.f32.mrf.mxu0 }
 0x10d   : > { %v2753_v35 = vpop.f32.mrf.mxu1  ;;  %1045 = vst.msk [vmem:[#allocation2 + $0x2c] sm:$0xf] %vm662_vm1, %v2599_v30  ;;  %v2597_v36 = vpack.c.bf16 %v940_v32, %v940_v32  ;;  %v1135_v38 = vadd.f32 %v2745_v34, %v2480_v28 }
 0x10e   : > { %1066 = vst.msk [vmem:[#allocation3 + $0x2c] sm:$0xf] %vm662_vm1, %v2603_v31  ;;  %v2601_v37 = vpack.c.bf16 %v1014_v33, %v1014_v33  ;;  %v1209_v39 = vadd.f32 %v2753_v35, %v2490_v29  ;;  %v1126_v40 = vpop.f32.mrf.mxu0 }
 0x10f   : > { %v1200_v41 = vpop.f32.mrf.mxu1  ;;  %1043 = vst.msk [vmem:[#allocation2 + $0x24] sm:$0xf] %vm662_vm1, %v2597_v36  ;;  %v2606_v42 = vpack.c.bf16 %v1135_v38, %v1135_v38  ;;  %v1127_v44 = vadd.f32 %v2480_v28, %v1126_v40 }
 0x110   : > { %1064 = vst.msk [vmem:[#allocation3 + $0x24] sm:$0xf] %vm662_vm1, %v2601_v37  ;;  %v2610_v43 = vpack.c.bf16 %v1209_v39, %v1209_v39  ;;  %v1201_v45 = vadd.f32 %v2490_v29, %v1200_v41  ;;  %v2746_v46 = vpop.f32.mrf.mxu0 }
 0x111   : > { %v2754_v47 = vpop.f32.mrf.mxu1  ;;  %1234 = vst.msk [vmem:[#allocation2 + $0x38] sm:$0xf] %vm662_vm1, %v2606_v42  ;;  %v2604_v48 = vpack.c.bf16 %v1127_v44, %v1127_v44  ;;  %v1138_v50 = vadd.f32 %v2746_v46, %v2480_v28 }
 0x112   : > { %1255 = vst.msk [vmem:[#allocation3 + $0x38] sm:$0xf] %vm662_vm1, %v2610_v43  ;;  %v2608_v49 = vpack.c.bf16 %v1201_v45, %v1201_v45  ;;  %v1212_v51 = vadd.f32 %v2754_v47, %v2490_v29  ;;  %v1129_v52 = vpop.f32.mrf.mxu0 }
 0x113   : > { %v1203_v53 = vpop.f32.mrf.mxu1  ;;  %1232 = vst.msk [vmem:[#allocation2 + $0x30] sm:$0xf] %vm662_vm1, %v2604_v48  ;;  %v2607_v54 = vpack.c.bf16 %v1138_v50, %v1138_v50  ;;  %v1130_v56 = vadd.f32 %v2480_v28, %v1129_v52 }
 0x114   : > { %1253 = vst.msk [vmem:[#allocation3 + $0x30] sm:$0xf] %vm662_vm1, %v2608_v49  ;;  %v2611_v55 = vpack.c.bf16 %v1212_v51, %v1212_v51  ;;  %v1204_v57 = vadd.f32 %v2490_v29, %v1203_v53 }
 0x115   : > { %1235 = vst.msk [vmem:[#allocation2 + $0x3c] sm:$0xf] %vm662_vm1, %v2607_v54  ;;  %v2605_v58 = vpack.c.bf16 %v1130_v56, %v1130_v56 }
 0x116   : > { %1256 = vst.msk [vmem:[#allocation3 + $0x3c] sm:$0xf] %vm662_vm1, %v2611_v55  ;;  %v2609_v59 = vpack.c.bf16 %v1204_v57, %v1204_v57 }
 0x117   : > { %1233 = vst.msk [vmem:[#allocation2 + $0x34] sm:$0xf] %vm662_vm1, %v2605_v58 }
 0x118   : > { %1254 = vst.msk [vmem:[#allocation3 + $0x34] sm:$0xf] %vm662_vm1, %v2609_v59 }
 0x119 PF: > { %v2956_v60 = vld [vmem:[%s3614_s3 + $0x8] sm:$0xff]   ;;  %v3110_v61 = vmov 0.0   ;;  %v2957_v62 = vld [vmem:[%s3614_s3] sm:$0xff]   ;;  %vm3111_vm2 = vmmov 0   ;;  %vm1351_vm3 = vcmask 64512   ;;  %vm1287_vm4 = vcmask 261120  }
 0x11a   : > { %2755 = vmatprep.subr.bf16.mxu0 %v3110_v61  ;;  %2763 = vmatprep.subr.bf16.mxu1 %v3110_v61  ;;  %v2959_v63 = vld [vmem:[#allocation2 + $0x8] sm:$0xff]   ;;  %v3406_v0 = vld [vmem:[%s3267_s25] sm:$0xff]   ;;  %v2963_v36 = vld [vmem:[%s3614_s3 + $0x18] sm:$0xff]   ;;  %vm1489_vm5 = vcmask 60416   ;;  %s3112_s11 = smov 8   ;;  %s3113_s19 = smov 16  }
 0x11b   : > { %2756 = vmatpush3.bf16.msra.mxu0 %v2956_v60  ;;  %2759 = vmatprep.mubr.msk.bf16.mxu0 %vm3111_vm2, %v3110_v61  ;;  %v1359_v1 = vsel %vm1351_vm3, %v2959_v63, 0  ;;  %v2960_v2 = vld [vmem:[#allocation2] sm:$0xff]   ;;  %v2961_v28 = vld [vmem:[#allocation3 + $0x8] sm:$0xff]   ;;  %v2964_v38 = vld [vmem:[%s3614_s3 + $0x10] sm:$0xff]   ;;  %vm1720_vm6 = vcmask 126016   ;;  %vm1951_vm7 = vcmask 191616  }
 0x11c   : > { %2757 = vmatprep.subr.bf16.mxu0 %v3110_v61  ;;  %2767 = vmatprep.mubr.msk.bf16.mxu1 %vm3111_vm2, %v3110_v61  ;;  %v1356_v3 = vsel %vm1351_vm3, %v2960_v2, 0  ;;  %v2503_v5 = vld [vmem:[%s3615_s4] ss:$0 sm:$0xff]  ;;  %v2965_v39 = vld [vmem:[#allocation2 + $0x18] sm:$0xff]   ;;  %v2966_v41 = vld [vmem:[#allocation2 + $0x10] sm:$0xff]   ;;  %s3114_s15 = smov 24  }
 0x11d   : > { %2764 = vmatpush3.bf16.xpose.msra.mxu1 %v1359_v1  ;;  %v2962_v29 = vld [vmem:[#allocation3] sm:$0xff]   ;;  %v1586_v40 = vsel %vm1351_vm3, %v2965_v39, 0  ;;  %v1583_v42 = vsel %vm1351_vm3, %v2966_v41, 0  ;;  %vm2182_vm8 = vcmask 257216   ;;  %s2574_s14 = sshll.u32 %s3096_s21, 2  ;;  %s3650_s29 = sld [smem:[#allocation18_spill]] }
 0x11e   : > { %2765 = vmatprep.subr.bf16.mxu1 %v3110_v61  ;;  %v2521_v50 = vld [vmem:[%s3615_s4 + $0x1] ss:$0 sm:$0xff]  ;;  %s2274_s13 = sadd.s32 %s2574_s14, %s3250_s26  ;;  %s2277_s25 = sshll.u32 %s3269_s10, 4  ;;  %s3553_s25 = int_to_ptr.vmem [resolvable:$true] %s2277_s25 }
 0x11f   : > { %2758 = vmatpush3.bf16.msra.mxu0 %v2957_v62  ;;  %s2575_s23 = sshll.u32 %s2274_s13, 7  ;;  %s3654_s21 = sand.u32 1, %s3084_s18  }
 0x120   : > { %2771 = vmatprep.subr.bf16.mxu0 %v3110_v61  ;;  %s3559_s26 = scalar_lea.sflag [#allocation6], %s3654_s21  ;;  %s3016_s30 = scalar_lea.vmem %s3553_s25, 256 }
 0x121   : > { %p3017_p1 = scmp.ne.s32.totalorder %s3553_s25, %s3016_s30  ;;  %s3115_s12 = smov [#allocation5]  }
 0x122   : > { %2760 = vmatmul.mubr.msk.bf16.vlgmr.msra.gmra.mxu0 %vm1287_vm4, %v3406_v0 }
 0x123   : > { %2775 = vmatprep.mubr.msk.bf16.mxu0 %vm3111_vm2, %v3110_v61  ;;  %2772 = vmatpush3.bf16.msra.mxu0 %v2961_v28  ;;  %p3018_p2 = pnand %p3017_p1, %p3228_p3 }
 0x124   : > { %2773 = vmatprep.subr.bf16.mxu0 %v3110_v61 }
 0x125   : > { %2766 = vmatpush3.bf16.xpose.msra.mxu1 %v1356_v3  ;;  %p3019_p4 = pneg %p3018_p2 }
 0x126   : > { %2787 = vmatprep.subr.bf16.mxu1 %v3110_v61 }
 0x127   : > { %2774 = vmatpush3.bf16.msra.mxu0 %v2962_v29 }
 0x128   : > { %2779 = vmatprep.subr.bf16.mxu0 %v3110_v61 }
 0x1e2   : > { %v1325_v4 = vpop.f32.mrf.mxu0 }
 0x1e3   : > { %v1326_v8 = vadd.f32 %v2503_v5, %v1325_v4 }
 0x1e4   : > { %v2761_v6 = vpop.f32.mrf.mxu0 }
 0x1e6   : > { %v1328_v7 = vpop.f32.mrf.mxu0 }
 0x1e7   : > { %v1329_v9 = vadd.f32 %v2503_v5, %v1328_v7 }
 0x1e8   : > { %v2762_v10 = vpop.f32.mrf.mxu0 }
 0x1e9   : > { %v1332_v11 = vpack.c.bf16 %v1329_v9, %v1326_v8 }
 0x1eb   : > { %2768 = vmatmul.mubr.msk.bf16.vlgmr.msra.gmra.mxu1 %vm1351_vm3, %v1332_v11  ;;  %v2967_v11 = vld [vmem:[#allocation3 + $0x18] sm:$0xff]  }
 0x1ec   : > { %2791 = vmatprep.mubr.msk.bf16.mxu1 %vm3111_vm2, %v3110_v61  ;;  %2788 = vmatpush3.bf16.xpose.msra.mxu1 %v1586_v40 }
 0x1ed   : > { %2789 = vmatprep.subr.bf16.mxu1 %v3110_v61 }
 0x1f4   : > { %2790 = vmatpush3.bf16.xpose.msra.mxu1 %v1583_v42 }
 0x1f5   : > { %2811 = vmatprep.subr.bf16.mxu1 %v3110_v61 }
 0x2ab   : > { %v1395_v12 = vpop.f32.mrf.mxu1 }
 0x2ac   : > { %v1402_v13 = vsel %vm1287_vm4, %v1395_v12, -inf }
 0x2ad   : > { %1403 = vmax.xlane.f32.xlu0 %v1402_v13  ;;  %v2769_v14 = vpop.f32.mrf.mxu1 }
 0x2af   : > { %v1398_v15 = vpop.f32.mrf.mxu1 }
 0x2b0   : > { %v1405_v16 = vsel %vm1287_vm4, %v1398_v15, -inf }
 0x2b1   : > { %1406 = vmax.xlane.f32.xlu0 %v1405_v16  ;;  %v2770_v17 = vpop.f32.mrf.mxu1 }
 0x336   : > { %v1404_v18 = vpop.xlane.xlu0 %1403 }
 0x337   : > { %v1408_v19 = vsub.f32 %v1395_v12, %v1404_v18  ;;  %v2968_v12 = vld [vmem:[#allocation3 + $0x10] sm:$0xff]  }
 0x339   : > { %v1410_v20 = vmul.f32 1.442695, %v1408_v19  ;;  %v2969_v19 = vld [vmem:[%s3614_s3 + $0x28] sm:$0xff]  }
 0x33a   : > { %v1407_v21 = vpop.xlane.xlu0 %1406 }
 0x33b   : > { %2984 = vpow2.f32 %v1410_v20  ;;  %v1409_v22 = vsub.f32 %v1398_v15, %v1407_v21  ;;  %v2970_v21 = vld [vmem:[%s3614_s3 + $0x20] sm:$0xff]  }
 0x33d   : > { %v1412_v23 = vmul.f32 1.442695, %v1409_v22  ;;  %v2971_v22 = vld [vmem:[#allocation2 + $0x28] sm:$0xff]  }
 0x33f   : > { %2986 = vpow2.f32 %v1412_v23  ;;  %v1817_v23 = vsel %vm1351_vm3, %v2971_v22, 0 }
 0x348   : > { %v2985_v24 = vpop.eup %2984 }
 0x349   : > { %v1414_v25 = vsel %vm1287_vm4, %v2985_v24, 0.0 }
 0x34a   : > { %1415 = vadd.xlane.f32.xlu1 %v1414_v25 }
 0x34c   : > { %v2987_v26 = vpop.eup %2986 }
 0x34d   : > { %v1417_v27 = vsel %vm1287_vm4, %v2987_v26, 0.0 }
 0x34e   : > { %1418 = vadd.xlane.f32.xlu1 %v1417_v27 }
 0x3d3   : > { %v1416_v30 = vpop.xlane.xlu1 %1415 }
 0x3d4   : > { %2988 = vrcp.f32 %v1416_v30 }
 0x3d7   : > { %v1419_v31 = vpop.xlane.xlu1 %1418 }
 0x3d8   : > { %2990 = vrcp.f32 %v1419_v31  ;;  %v2538_v31 = vld [vmem:[%s3615_s4 + $0x2] ss:$0 sm:$0xff] }
 0x3e1   : > { %v2989_v32 = vpop.eup %2988 }
 0x3e2   : > { %v1422_v34 = vmul.f32 %v2989_v32, %v2985_v24  ;;  %v2972_v24 = vld [vmem:[#allocation2 + $0x20] sm:$0xff]  }
 0x3e3   : > { %v1814_v25 = vsel %vm1351_vm3, %v2972_v24, 0 }
 0x3e5   : > { %v2991_v33 = vpop.eup %2990 }
 0x3e6   : > { %v1423_v35 = vmul.f32 %v2991_v33, %v2987_v26 }
 0x3e8   : > { %v1424_v37 = vpack.c.bf16 %v1423_v35, %v1422_v34 }
 0x3ea   : > { %2776 = vmatmul.mubr.msk.bf16.vlgmr.msra.gmra.mxu0 %vm1287_vm4, %v1424_v37 }
 0x3eb   : > { %2780 = vmatpush3.bf16.msra.mxu0 %v2963_v36  ;;  %2783 = vmatprep.mubr.msk.bf16.mxu0 %vm3111_vm2, %v3110_v61 }
 0x3ec   : > { %2781 = vmatprep.subr.bf16.mxu0 %v3110_v61 }
 0x3ef   : > { %2782 = vmatpush3.bf16.msra.mxu0 %v2964_v38 }
 0x3f0   : > { %2795 = vmatprep.subr.bf16.mxu0 %v3110_v61 }
 0x3f2   : > { %2784 = vmatmul.mubr.msk.bf16.vlgmr.msra.gmra.mxu0 %vm1287_vm4, %v3406_v0 }
 0x3f3   : > { %2799 = vmatprep.mubr.msk.bf16.mxu0 %vm3111_vm2, %v3110_v61  ;;  %2796 = vmatpush3.bf16.msra.mxu0 %v2967_v11 }
 0x3f4   : > { %2797 = vmatprep.subr.bf16.mxu0 %v3110_v61 }
 0x3f7   : > { %2798 = vmatpush3.bf16.msra.mxu0 %v2968_v12 }
 0x3f8   : > { %2803 = vmatprep.subr.bf16.mxu0 %v3110_v61 }
 0x4aa   : > { %v1474_v43 = vpop.f32.mrf.mxu0 }
 0x4ab   : > { %v2612_v44 = vpack.c.bf16 %v1474_v43, %v1474_v43 }
 0x4ac   : > { %v2777_v45 = vpop.f32.mrf.mxu0 }
 0x4ad   : > { %1490 = vst.msk [vmem:[#allocation4] sm:$0xf] %vm1489_vm5, %v2612_v44 }
 0x4ae   : > { %v1477_v46 = vpop.f32.mrf.mxu0 }
 0x4af   : > { %v2613_v47 = vpack.c.bf16 %v1477_v46, %v1477_v46 }
 0x4b0   : > { %v2778_v48 = vpop.f32.mrf.mxu0 }
 0x4b1   : > { %1491 = vst.msk [vmem:[#allocation4 + $0x4] sm:$0xf] %vm1489_vm5, %v2613_v47 }
 0x4b2   : > { %v1551_v49 = vpop.f32.mrf.mxu0 }
 0x4b3   : > { %v1552_v53 = vadd.f32 %v2521_v50, %v1551_v49 }
 0x4b4   : > { %v2785_v51 = vpop.f32.mrf.mxu0 }
 0x4b6   : > { %v1554_v52 = vpop.f32.mrf.mxu0 }
 0x4b7   : > { %v1555_v54 = vadd.f32 %v2521_v50, %v1554_v52 }
 0x4b8   : > { %v2786_v55 = vpop.f32.mrf.mxu0 }
 0x4b9   : > { %v1558_v56 = vpack.c.bf16 %v1555_v54, %v1552_v53  ;;  %v2973_v54 = vld [vmem:[#allocation3 + $0x28] sm:$0xff]   ;;  %v2974_v55 = vld [vmem:[#allocation3 + $0x20] sm:$0xff]  }
 0x4bb   : > { %2792 = vmatmul.mubr.msk.bf16.vlgmr.msra.gmra.mxu1 %vm1351_vm3, %v1558_v56 }
 0x4bc   : > { %2815 = vmatprep.mubr.msk.bf16.mxu1 %vm3111_vm2, %v3110_v61  ;;  %2812 = vmatpush3.bf16.xpose.msra.mxu1 %v1817_v23 }
 0x4bd   : > { %2813 = vmatprep.subr.bf16.mxu1 %v3110_v61 }
 0x4c4   : > { %2814 = vmatpush3.bf16.xpose.msra.mxu1 %v1814_v25 }
 0x4c5   : > { %2835 = vmatprep.subr.bf16.mxu1 %v3110_v61 }
 0x57b   : > { %v1622_v57 = vpop.f32.mrf.mxu1 }
 0x57c   : > { %v1629_v58 = vsel %vm1287_vm4, %v1622_v57, -inf }
 0x57d   : > { %1630 = vmax.xlane.f32.xlu0 %v1629_v58  ;;  %v2793_v59 = vpop.f32.mrf.mxu1 }
 0x57f   : > { %v1625_v60 = vpop.f32.mrf.mxu1 }
 0x580   : > { %v1632_v62 = vsel %vm1287_vm4, %v1625_v60, -inf }
 0x581   : > { %1633 = vmax.xlane.f32.xlu1 %v1632_v62  ;;  %v2794_v63 = vpop.f32.mrf.mxu1 }
 0x582   : > { %v2975_v63 = vld [vmem:[%s3614_s3 + $0x38] sm:$0xff]  }
 0x606   : > { %v1631_v1 = vpop.xlane.xlu0 %1630 }
 0x607   : > { %v1635_v2 = vsub.f32 %v1622_v57, %v1631_v1 }
 0x609   : > { %v1637_v3 = vmul.f32 1.442695, %v1635_v2  ;;  %v2976_v2 = vld [vmem:[%s3614_s3 + $0x30] sm:$0xff]  }
 0x60a   : > { %v1634_v4 = vpop.xlane.xlu1 %1633 }
 0x60b   : > { %2992 = vpow2.f32 %v1637_v3  ;;  %v1636_v5 = vsub.f32 %v1625_v60, %v1634_v4  ;;  %v2977_v3 = vld [vmem:[#allocation2 + $0x38] sm:$0xff]  }
 0x60c   : > { %v2048_v4 = vsel %vm1351_vm3, %v2977_v3, 0 }
 0x60d   : > { %v1639_v6 = vmul.f32 1.442695, %v1636_v5  ;;  %v2978_v5 = vld [vmem:[#allocation2 + $0x30] sm:$0xff]  }
 0x60f   : > { %2994 = vpow2.f32 %v1639_v6  ;;  %v2045_v6 = vsel %vm1351_vm3, %v2978_v5, 0 }
 0x618   : > { %v2993_v7 = vpop.eup %2992 }
 0x619   : > { %v1641_v8 = vsel %vm1287_vm4, %v2993_v7, 0.0 }
 0x61a   : > { %1642 = vadd.xlane.f32.xlu0 %v1641_v8 }
 0x61c   : > { %v2995_v9 = vpop.eup %2994 }
 0x61d   : > { %v1644_v10 = vsel %vm1287_vm4, %v2995_v9, 0.0 }
 0x61e   : > { %1645 = vadd.xlane.f32.xlu1 %v1644_v10 }
 0x6a3   : > { %v1643_v13 = vpop.xlane.xlu0 %1642 }
 0x6a4   : > { %2996 = vrcp.f32 %v1643_v13 }
 0x6a7   : > { %v1646_v14 = vpop.xlane.xlu1 %1645 }
 0x6a8   : > { %2998 = vrcp.f32 %v1646_v14 }
 0x6b1   : > { %v2997_v15 = vpop.eup %2996 }
 0x6b2   : > { %v1649_v17 = vmul.f32 %v2997_v15, %v2993_v7 }
 0x6b5   : > { %v2999_v16 = vpop.eup %2998 }
 0x6b6   : > { %v1650_v18 = vmul.f32 %v2999_v16, %v2995_v9 }
 0x6b8   : > { %v1651_v20 = vpack.c.bf16 %v1650_v18, %v1649_v17 }
 0x6ba   : > { %2800 = vmatmul.mubr.msk.bf16.vlgmr.msra.gmra.mxu0 %vm1287_vm4, %v1651_v20 }
 0x6bb   : > { %2804 = vmatpush3.bf16.msra.mxu0 %v2969_v19  ;;  %2807 = vmatprep.mubr.msk.bf16.mxu0 %vm3111_vm2, %v3110_v61 }
 0x6bc   : > { %2805 = vmatprep.subr.bf16.mxu0 %v3110_v61 }
 0x6bf   : > { %2806 = vmatpush3.bf16.msra.mxu0 %v2970_v21 }
 0x6c0   : > { %2819 = vmatprep.subr.bf16.mxu0 %v3110_v61 }
 0x6c2   : > { %2808 = vmatmul.mubr.msk.bf16.vlgmr.msra.gmra.mxu0 %vm1287_vm4, %v3406_v0 }
 0x6c3   : > { %2823 = vmatprep.mubr.msk.bf16.mxu0 %vm3111_vm2, %v3110_v61  ;;  %2820 = vmatpush3.bf16.msra.mxu0 %v2973_v54 }
 0x6c4   : > { %2821 = vmatprep.subr.bf16.mxu0 %v3110_v61 }
 0x6c7   : > { %2822 = vmatpush3.bf16.msra.mxu0 %v2974_v55 }
 0x6c8   : > { %2827 = vmatprep.subr.bf16.mxu0 %v3110_v61 }
 0x77a   : > { %v3479_v26 = vpop.f32.mrf.mxu0 }
 0x77c   : > { %v2801_v27 = vpop.f32.mrf.mxu0 }
 0x77e   : > { %v3481_v28 = vpop.f32.mrf.mxu0 }
 0x780   : > { %v2802_v29 = vpop.f32.mrf.mxu0 }
 0x782   : > { %v1782_v30 = vpop.f32.mrf.mxu0 }
 0x783   : > { %v1783_v34 = vadd.f32 %v2538_v31, %v1782_v30 }
 0x784   : > { %v2809_v32 = vpop.f32.mrf.mxu0 }
 0x786   : > { %v1785_v33 = vpop.f32.mrf.mxu0 }
 0x787   : > { %v1786_v35 = vadd.f32 %v2538_v31, %v1785_v33 }
 0x788   : > { %v2810_v36 = vpop.f32.mrf.mxu0 }
 0x789   : > { %v1789_v37 = vpack.c.bf16 %v1786_v35, %v1783_v34  ;;  %v2615_v36 = vpack.c.bf16 %v3481_v28, %v3481_v28 }
 0x78b   : > { %2816 = vmatmul.mubr.msk.bf16.vlgmr.msra.gmra.mxu1 %vm1351_vm3, %v1789_v37  ;;  %v2614_v37 = vpack.c.bf16 %v3479_v26, %v3479_v26 }
 0x78c   : > { %2839 = vmatprep.mubr.msk.bf16.mxu1 %vm3111_vm2, %v3110_v61  ;;  %2836 = vmatpush3.bf16.xpose.msra.mxu1 %v2048_v4 }
 0x78d   : > { %2837 = vmatprep.subr.bf16.mxu1 %v3110_v61 }
 0x794   : > { %2838 = vmatpush3.bf16.xpose.msra.mxu1 %v2045_v6 }
 0x84b   : > { %v1853_v38 = vpop.f32.mrf.mxu1 }
 0x84c   : > { %v1860_v39 = vsel %vm1287_vm4, %v1853_v38, -inf }
 0x84d   : > { %1861 = vmax.xlane.f32.xlu0 %v1860_v39  ;;  %v2817_v40 = vpop.f32.mrf.mxu1 }
 0x84e   : > { %v2980_v40 = vld [vmem:[#allocation3 + $0x30] sm:$0xff]  }
 0x84f   : > { %v1856_v41 = vpop.f32.mrf.mxu1 }
 0x850   : > { %v1863_v42 = vsel %vm1287_vm4, %v1856_v41, -inf }
 0x851   : > { %1864 = vmax.xlane.f32.xlu1 %v1863_v42  ;;  %v2818_v43 = vpop.f32.mrf.mxu1 }
 0x8d6   : > { %v1862_v44 = vpop.xlane.xlu0 %1861 }
 0x8d7   : > { %v1866_v45 = vsub.f32 %v1853_v38, %v1862_v44  ;;  %v2979_v38 = vld [vmem:[#allocation3 + $0x38] sm:$0xff]  }
 0x8d9   : > { %v1868_v46 = vmul.f32 1.442695, %v1866_v45 }
 0x8da   : > { %v1865_v47 = vpop.xlane.xlu1 %1864 }
 0x8db   : > { %3000 = vpow2.f32 %v1868_v46  ;;  %v1867_v48 = vsub.f32 %v1856_v41, %v1865_v47 }
 0x8dd   : > { %v1870_v49 = vmul.f32 1.442695, %v1867_v48 }
 0x8df   : > { %3002 = vpow2.f32 %v1870_v49 }
 0x8e8   : > { %v3001_v50 = vpop.eup %3000 }
 0x8e9   : > { %v1872_v51 = vsel %vm1287_vm4, %v3001_v50, 0.0 }
 0x8ea   : > { %1873 = vadd.xlane.f32.xlu0 %v1872_v51  ;;  %v2981_v51 = vld [vmem:[%s3620_s9 + $0x8] sm:$0xff]  }
 0x8ec   : > { %v3003_v52 = vpop.eup %3002 }
 0x8ed   : > { %v1875_v53 = vsel %vm1287_vm4, %v3003_v52, 0.0 }
 0x8ee   : > { %1876 = vadd.xlane.f32.xlu1 %v1875_v53 }
 0x973   : > { %v1874_v56 = vpop.xlane.xlu0 %1873 }
 0x974   : > { %3004 = vrcp.f32 %v1874_v56 }
 0x977   : > { %v1877_v57 = vpop.xlane.xlu1 %1876 }
 0x978   : > { %3006 = vrcp.f32 %v1877_v57 }
 0x981   : > { %v3005_v58 = vpop.eup %3004 }
 0x982   : > { %v1880_v60 = vmul.f32 %v3005_v58, %v3001_v50 }
 0x985   : > { %v3007_v59 = vpop.eup %3006 }
 0x986   : > { %v1881_v62 = vmul.f32 %v3007_v59, %v3003_v52  ;;  %v2982_v52 = vld [vmem:[%s3620_s9] sm:$0xff]  }
 0x988   : > { %v1882_v1 = vpack.c.bf16 %v1881_v62, %v1880_v60  ;;  %v2567_v62 = vld [vmem:[%s3650_s29] ss:$0 sm:$0xff] }
 0x98a   : > { %2824 = vmatmul.mubr.msk.bf16.vlgmr.msra.gmra.mxu0 %vm1287_vm4, %v1882_v1 }
 0x98b   : > { %2828 = vmatpush3.bf16.msra.mxu0 %v2975_v63  ;;  %2831 = vmatprep.mubr.msk.bf16.mxu0 %vm3111_vm2, %v3110_v61 }
 0x98c   : > { %2829 = vmatprep.subr.bf16.mxu0 %v3110_v61 }
 0x98f   : > { %2830 = vmatpush3.bf16.msra.mxu0 %v2976_v2 }
 0x990   : > { %2843 = vmatprep.subr.bf16.mxu0 %v3110_v61 }
 0x992   : > { %2832 = vmatmul.mubr.msk.bf16.vlgmr.msra.gmra.mxu0 %vm1287_vm4, %v3406_v0  ;;  %v2555_v0 = vld [vmem:[%s3615_s4 + $0x3] ss:$0 sm:$0xff] }
 0x993   : > { %2847 = vmatprep.mubr.msk.bf16.mxu0 %vm3111_vm2, %v3110_v61  ;;  %2844 = vmatpush3.bf16.msra.mxu0 %v2979_v38 }
 0x994   : > { %2845 = vmatprep.subr.bf16.mxu0 %v3110_v61 }
 0x997   : > { %2846 = vmatpush3.bf16.msra.mxu0 %v2980_v40 }
 0x998   : > { %2851 = vmatprep.subr.bf16.mxu0 %v3110_v61 }
 0xa4a   : > { %v1932_v7 = vpop.f32.mrf.mxu0 }
 0xa4b   : > { %v2616_v39 = vpack.c.bf16 %v1932_v7, %v1932_v7 }
 0xa4c   : > { %v2825_v8 = vpop.f32.mrf.mxu0 }
 0xa4e   : > { %v1935_v9 = vpop.f32.mrf.mxu0 }
 0xa4f   : > { %v2617_v41 = vpack.c.bf16 %v1935_v9, %v1935_v9 }
 0xa50   : > { %v2826_v10 = vpop.f32.mrf.mxu0 }
 0xa52   : > { %v2013_v11 = vpop.f32.mrf.mxu0 }
 0xa53   : > { %v2014_v14 = vadd.f32 %v2555_v0, %v2013_v11 }
 0xa54   : > { %v2833_v12 = vpop.f32.mrf.mxu0 }
 0xa56   : > { %v2016_v13 = vpop.f32.mrf.mxu0 }
 0xa57   : > { %v2017_v15 = vadd.f32 %v2555_v0, %v2016_v13 }
 0xa58   : > { %v2834_v16 = vpop.f32.mrf.mxu0 }
 0xa59   : > { %v2020_v17 = vpack.c.bf16 %v2017_v15, %v2014_v14 }
 0xa5b   : > { %2840 = vmatmul.mubr.msk.bf16.vlgmr.msra.gmra.mxu1 %vm1351_vm3, %v2020_v17 }
 0xb1b   : > { %v2084_v18 = vpop.f32.mrf.mxu1 }
 0xb1c   : > { %v2091_v19 = vsel %vm1287_vm4, %v2084_v18, -inf }
 0xb1d   : > { %2092 = vmax.xlane.f32.xlu0 %v2091_v19  ;;  %v2841_v20 = vpop.f32.mrf.mxu1 }
 0xb1f   : > { %v2087_v21 = vpop.f32.mrf.mxu1 }
 0xb20   : > { %v2094_v22 = vsel %vm1287_vm4, %v2087_v21, -inf }
 0xb21   : > { %2095 = vmax.xlane.f32.xlu1 %v2094_v22  ;;  %v2842_v23 = vpop.f32.mrf.mxu1 }
 0xba6   : > { %v2093_v24 = vpop.xlane.xlu0 %2092 }
 0xba7   : > { %v2097_v25 = vsub.f32 %v2084_v18, %v2093_v24 }
 0xba9   : > { %v2099_v27 = vmul.f32 1.442695, %v2097_v25 }
 0xbaa   : > { %v2096_v29 = vpop.xlane.xlu1 %2095 }
 0xbab   : > { %3008 = vpow2.f32 %v2099_v27  ;;  %v2098_v30 = vsub.f32 %v2087_v21, %v2096_v29 }
 0xbad   : > { %v2101_v31 = vmul.f32 1.442695, %v2098_v30 }
 0xbaf   : > { %3010 = vpow2.f32 %v2101_v31 }
 0xbb8   : > { %v3009_v32 = vpop.eup %3008 }
 0xbb9   : > { %v2103_v33 = vsel %vm1287_vm4, %v3009_v32, 0.0 }
 0xbba   : > { %2104 = vadd.xlane.f32.xlu0 %v2103_v33 }
 0xbbc   : > { %v3011_v34 = vpop.eup %3010 }
 0xbbd   : > { %v2106_v35 = vsel %vm1287_vm4, %v3011_v34, 0.0 }
 0xbbe   : > { %2107 = vadd.xlane.f32.xlu1 %v2106_v35 }
 0xbcf   : > { %1716 = vrot.lane.b32.xlu1 %v2615_v36, %s3112_s11 }
 0xbd0   : > { %1714 = vrot.lane.b32.xlu0 %v2614_v37, %s3112_s11 }
 0xbd3   : > { %1945 = vrot.lane.b32.xlu1 %v2616_v39, %s3113_s19 }
 0xbd7   : > { %1947 = vrot.lane.b32.xlu1 %v2617_v41, %s3113_s19  ;;  %s3652_s19 = sld [smem:[#allocation19_spill]] }
 0xbdd   : > { %s3653_s27 = smov %s3652_s19  ;;  %s3551_s20 = scalar_lea.hbm %s3652_s19, %s2575_s23 }
 0xc43   : > { %v2105_v28 = vpop.xlane.xlu0 %2104 }
 0xc44   : > { %3012 = vrcp.f32 %v2105_v28 }
 0xc47   : > { %v1715_v26 = vpop.permute.xlu0 %1714  ;;  %v2108_v42 = vpop.xlane.xlu1 %2107 }
 0xc48   : > { %1721 = vst.msk [vmem:[#allocation4] sm:$0xf] %vm1720_vm6, %v1715_v26  ;;  %3014 = vrcp.f32 %v2108_v42 }
 0xc4b   : > { %v1717_v43 = vpop.permute.xlu1 %1716 }
 0xc4c   : > { %1722 = vst.msk [vmem:[#allocation4 + $0x4] sm:$0xf] %vm1720_vm6, %v1717_v43 }
 0xc4f   : > { %v1946_v44 = vpop.permute.xlu1 %1945 }
 0xc50   : > { %1952 = vst.msk [vmem:[#allocation4] sm:$0xf] %vm1951_vm7, %v1946_v44 }
 0xc51   : > { %v3013_v45 = vpop.eup %3012 }
 0xc52   : > { %v2111_v48 = vmul.f32 %v3013_v45, %v3009_v32 }
 0xc53   : > { %v1948_v46 = vpop.permute.xlu1 %1947 }
 0xc54   : > { %1953 = vst.msk [vmem:[#allocation4 + $0x4] sm:$0xf] %vm1951_vm7, %v1948_v46 }
 0xc55   : > { %v3015_v47 = vpop.eup %3014 }
 0xc56   : > { %v2112_v49 = vmul.f32 %v3015_v47, %v3011_v34 }
 0xc58   : > { %v2113_v50 = vpack.c.bf16 %v2112_v49, %v2111_v48 }
 0xc5a   : > { %2848 = vmatmul.mubr.msk.bf16.vlgmr.msra.gmra.mxu0 %vm1287_vm4, %v2113_v50 }
 0xc5b   : > { %2855 = vmatprep.mubr.msk.bf16.mxu0 %vm3111_vm2, %v3110_v61  ;;  %2852 = vmatpush3.bf16.msra.mxu0 %v2981_v51 }
 0xc5c   : > { %2853 = vmatprep.subr.bf16.mxu0 %v3110_v61 }
 0xc5f   : > { %2854 = vmatpush3.bf16.msra.mxu0 %v2982_v52 }
 0xd1a   : > { %v2163_v53 = vpop.f32.mrf.mxu0 }
 0xd1b   : > { %v2618_v54 = vpack.c.bf16 %v2163_v53, %v2163_v53 }
 0xd1c   : > { %v2849_v55 = vpop.f32.mrf.mxu0 }
 0xd1d   : > { %2176 = vrot.lane.b32.xlu0 %v2618_v54, %s3114_s15 }
 0xd1e   : > { %v2166_v56 = vpop.f32.mrf.mxu0 }
 0xd1f   : > { %v2619_v57 = vpack.c.bf16 %v2166_v56, %v2166_v56 }
 0xd20   : > { %v2850_v58 = vpop.f32.mrf.mxu0 }
 0xd21   : > { %2178 = vrot.lane.b32.xlu1 %v2619_v57, %s3114_s15  ;;  %s3020_s15 = sshll.u32 %s3115_s12, 4  ;;  %s3021_s15 = int_to_ptr.vmem [resolvable:$false] %s3020_s15 }
 0xd22   : > { %s3022_s14 = scalar_lea.vmem %s3021_s15, 512  ;;  %p3023_p5 = scmp.lt.s32.totalorder %s3553_s25, %s3021_s15 }
 0xd23   : > { %p3024_p6 = scmp.lt.s32.totalorder %s3022_s14, %s3016_s30 }
 0xd25   : > { %p3025_p7 = por %p3024_p6, %p3023_p5 }
 0xd27   : > { %p3026_p9 = pnand %p3025_p7, %p3019_p4 }
 0xd8f   : > { %v2177_v59 = vpop.permute.xlu0 %2176 }
 0xd90   : > { %2183 = vst.msk [vmem:[#allocation4] sm:$0xf] %vm2182_vm8, %v2177_v59 }
 0xd93   : > { %v2179_v60 = vpop.permute.xlu1 %2178 }
 0xd94   : > { %2184 = vst.msk [vmem:[#allocation4 + $0x4] sm:$0xf] %vm2182_vm8, %v2179_v60 }
 0xd9b   : > { %v2983_v61 = vld [vmem:[#allocation4] sm:$0xff]  }
 0xd9c   : > { %2856 = vmatmul.mubr.msk.bf16.vlgmr.msra.gmra.mxu0 %vm1287_vm4, %v2983_v61 }
 0xe5c   : > { %v2252_v63 = vpop.f32.mrf.mxu0 }
 0xe5d   : > { %v2253_v1 = vadd.f32 %v2567_v62, %v2252_v63 }
 0xe5e   : > { %v2857_v2 = vpop.f32.mrf.mxu0 }
 0xe5f   : > { %2259 = vst.msk [vmem:[%s3269_s10] sm:$0xff] %vm1287_vm4, %v2253_v1 }
 0xe60   : > { %v2255_v3 = vpop.f32.mrf.mxu0 }
 0xe61   : > { %v2256_v4 = vadd.f32 %v2567_v62, %v2255_v3 }
 0xe62   : > { %v2858_v5 = vpop.f32.mrf.mxu0 }
 0xe63   : > { %2260 = vst.msk [vmem:[%s3269_s10 + $0x8] sm:$0xff] %vm1287_vm4, %v2256_v4 }
 0xe64   : > { %3029 = shalt.err (!%p3026_p9)
}
 0xe65   : > { %s3030_s10 = scalar_lea.hbm %s3551_s20, 256  ;;  %s3034_s29 = scalar_lea.hbm %s3653_s27, 1024 }
 0xe66   : > { %p3031_p10 = scmp.ne.s32.totalorder %s3551_s20, %s3030_s10  ;;  %p3035_p13 = scmp.lt.s32.totalorder %s3551_s20, %s3653_s27 }
 0xe67   : > { %p3036_p0 = scmp.lt.s32.totalorder %s3034_s29, %s3030_s10 }
 0xe68   : > { %p3032_p11 = pnand %p3031_p10, %p3228_p3 }
 0xe69   : > { %p3037_p1 = por %p3036_p0, %p3035_p13 }
 0xe6a   : > { %p3033_p12 = pneg %p3032_p11 }
 0xe6c   : > { %p3038_p2 = pnand %p3037_p1, %p3033_p12 }
 0xe6e   : > { %3041 = shalt.err (!%p3038_p2)
}
 0xe6f   : > { %s3116_s17 = smov 128  }
 0xe70   : > { %2859 = dma.vmem_to_hbm [thread:$0]  (%p3228_p3), %s3553_s25, 256, %s3551_s20, %s3559_s26, %s3116_s17, %s3116_s17, %s3112_s11  }
 0xe71 PF: > { %s3655_s28 = sld [smem:[#allocation12_spill]] }
 0xe72   : > { %s3656_s19 = sld [smem:[#allocation8_spill]] }
 0xe77   : > { %p2865_p4 = scmp.ge.s32.totalorder %s3655_s28, 2 }
 0xe78   : > { %s2292_s30 = sand.u32 1, %s3656_s19  }
 0xe79   : > { %p2862_p5 = pnand %p2865_p4, %p3237_p8  ;;  %s2293_s12 = scalar_lea.sflag [#allocation6], %s2292_s30 }
 0xe7b   : > { %p2863_p6 = pneg %p2862_p5 }
 0xe7d   : > { %3075 = dma.done.wait (%p2863_p6), %s2293_s12, 256  }
 0xe7e   : > { %3077 = vsyncadd (%p2863_p6), %s2293_s12, 4294967040  ;;  %s24_s24 = sadd.s32 1, %s3655_s28   ;;  %s3658_s22 = sld [smem:[#allocation9_spill]] }
 0xe7f   : > { %p21_p7 = scmp.ge.s32.totalorder %s24_s24, 6   ;;  %s3659_s19 = sld [smem:[#allocation17_spill]] }
 0xe80   : > { %s3660_s20 = sld [smem:[#allocation10_spill]]  ;;  %s3664_s17 = smov %s3084_s18 }
 0xe81   : > { %s3661_s21 = sld [smem:[#allocation11_spill]] }
 0xe82   : > { %s3662_s11 = sld [smem:[#allocation13_spill]] }
 0xe83   : > { %s3663_s23 = sld [smem:[#allocation15_spill]] }
 0xe84   : > { %s3665_s18 = smov %s3658_s22  ;;  %23 = sbr.rel (!%p21_p7) target bundleno = 8 (0x8), region = 139 }
 0xe88   : > { %s3666_s22 = smov %s3662_s11 }
 0xe89   :  { %2298 = vsyncpa [#allocation6], 1 }
 0xe8a   :  { %2300 = vsyncpa [#allocation6 + $0x1], 1 }

</bundles_post_ra>
